<compile_context>
chip_gen: v7x
topology: tpu7x:2x2x1
jax: 0.10.0
libtpu: 0.0.40
codegen_flags: <defaults>
</compile_context>

<pallas_src>
from itertools import product

import jax
import jax.numpy as jnp
from jax import lax
from jax.experimental import pallas as pl
from jax.experimental.pallas import tpu as pltpu

EPS = 1e-5


def _round_up(x, m):
    return (x + m - 1) // m * m


def _make_kernel(*, TH, R1, R_IN, W_out, C_in, C_pad, stride, H_out, has_proj):
    taps = tuple(product(range(3), range(3)))

    def kernel(x_ref, w1_ref, b1_ref, w2_ref, b2_ref, *rest):
        if has_proj:
            wsk_ref, bsk_ref, out_ref = rest
        else:
            (out_ref,) = rest

        t = pl.program_id(1)
        h0 = t * TH
        row_lo = pl.multiple_of(t * (TH * stride), TH * stride)

        # All (over-padded) input rows this tile needs, incl. conv1/conv2 halo.
        xin = x_ref[0, pl.ds(row_lo, R_IN), :, :].astype(jnp.float32)

        # ---- conv1 (+ folded BN1, ReLU): one matmul, K = 9*C_in -------------
        cols = []
        for dy, dx in taps:
            cols.append(xin[dy:dy + (R1 - 1) * stride + 1:stride,
                            dx:dx + (W_out - 1) * stride + 1:stride, :])
        patches = jnp.concatenate(cols, axis=-1).reshape(R1 * W_out, 9 * C_in)
        out1 = jnp.dot(patches.astype(jnp.bfloat16), w1_ref[...],
                       preferred_element_type=jnp.float32)
        out1 = jnp.maximum(out1 + b1_ref[...], 0.0).reshape(R1, W_out, C_pad)

        # Zero halo rows that fall outside the image (== conv2's zero padding).
        rext = (h0 - 1) + lax.broadcasted_iota(jnp.int32, (R1, W_out, C_pad), 0)
        out1 = jnp.where((rext >= 0) & (rext < H_out), out1, 0.0)

        # Pad W with one zero column on each side (value concat, no scratch).
        zcol = jnp.zeros((R1, 1, C_pad), jnp.float32)
        mid = jnp.concatenate([zcol, out1, zcol], axis=1)  # (R1, W_out+2, C_pad)

        # ---- conv2 (+ folded BN2): 9 taps, K = C_pad each -------------------
        acc2 = jnp.zeros((TH * W_out, C_pad), jnp.float32)
        for idx, (dy, dx) in enumerate(taps):
            win = mid[dy:dy + TH, dx:dx + W_out, :].reshape(TH * W_out, C_pad)
            acc2 = acc2 + jnp.dot(win.astype(jnp.bfloat16), w2_ref[idx],
                                  preferred_element_type=jnp.float32)
        out2 = acc2 + b2_ref[...]

        # ---- skip path ------------------------------------------------------
        center = xin[stride + 1:stride + 1 + (TH - 1) * stride + 1:stride,
                     1:1 + (W_out - 1) * stride + 1:stride, :]
        center = center.reshape(TH * W_out, C_in)
        if has_proj:  # 1x1 conv (stride s) + folded BN
            skip = jnp.dot(center.astype(jnp.bfloat16), wsk_ref[...],
                           preferred_element_type=jnp.float32) + bsk_ref[...]
        else:         # identity (C_in == C_out, stride == 1)
            skip = center
            if C_pad != C_in:
                skip = jnp.concatenate(
                    [skip, jnp.zeros((TH * W_out, C_pad - C_in), jnp.float32)],
                    axis=-1)

        res = jnp.maximum(out2 + skip, 0.0)
        out_ref[...] = res.reshape(1, TH, W_out, C_pad).astype(out_ref.dtype)

    return kernel


def _fold_bn(gamma, beta, mean, var):
    scale = (gamma / jnp.sqrt(var + EPS)).astype(jnp.float32)
    bias = (beta - mean * scale).astype(jnp.float32)
    return scale, bias


def _pad_last(a, c_pad):
    extra = c_pad - a.shape[-1]
    if extra > 0:
        a = jnp.pad(a, [(0, 0)] * (a.ndim - 1) + [(0, extra)])
    return a


def _pick_row_tile(h_out):
    if h_out <= 8:
        return h_out
    for cand in (8, 4, 2):
        if h_out % cand == 0:
            return cand
    return 1


def wave_residual_block(x_nchw, params, stride=1):
    N, C_in, H, W = x_nchw.shape
    C_out = params["w1"].shape[0]
    s = int(stride)
    has_proj = (s != 1) or (C_in != C_out)
    H_out = (H - 1) // s + 1
    W_out = (W - 1) // s + 1
    C_pad = _round_up(C_out, 128)          # lane-dense outputs / weights

    TH = _pick_row_tile(H_out)             # output rows per tile
    T = H_out // TH
    R1 = TH + 2                            # conv1 rows per tile (+/-1 halo)
    R_IN = (TH + 1) * s + 3                # padded-input rows per tile

    # NCHW -> NHWC, bf16; over-pad rows so every halo read stays in bounds.
    x_nhwc = jnp.transpose(x_nchw, (0, 2, 3, 1)).astype(jnp.bfloat16)
    xpad = jnp.pad(x_nhwc, ((0, 0), (s + 1, s + 1), (1, 1), (0, 0)))
    Hp, W_in = H + 2 * s + 2, W + 2

    # Fold eval-mode BN into the conv weights; pad C_out -> C_pad.
    s1, b1 = _fold_bn(*params["bn1"])
    s2, b2 = _fold_bn(*params["bn2"])
    w1 = jnp.transpose(params["w1"], (2, 3, 1, 0)).reshape(9 * C_in, C_out) * s1[None, :]
    w2 = jnp.transpose(params["w2"], (2, 3, 1, 0)).reshape(9, C_out, C_out) * s2[None, None, :]
    w1 = _pad_last(w1, C_pad).astype(jnp.bfloat16)
    w2 = jnp.pad(w2, ((0, 0), (0, C_pad - C_out), (0, C_pad - C_out))).astype(jnp.bfloat16)
    b1p, b2p = _pad_last(b1[None, :], C_pad), _pad_last(b2[None, :], C_pad)

    operands = [xpad, w1, b1p, w2, b2p]
    in_specs = [
        pl.BlockSpec((1, Hp, W_in, C_in), lambda n, t: (n, 0, 0, 0)),   # image resident per-n
        pl.BlockSpec((9 * C_in, C_pad), lambda n, t: (0, 0)),           # weights resident
        pl.BlockSpec((1, C_pad), lambda n, t: (0, 0)),
        pl.BlockSpec((9, C_pad, C_pad), lambda n, t: (0, 0, 0)),
        pl.BlockSpec((1, C_pad), lambda n, t: (0, 0)),
    ]
    if has_proj:
        ssk, bsk = _fold_bn(*params["bnsk"])
        wsk = params["wsk"].reshape(C_out, C_in).T * ssk[None, :]
        operands += [_pad_last(wsk, C_pad).astype(jnp.bfloat16),
                     _pad_last(bsk[None, :], C_pad)]
        in_specs += [pl.BlockSpec((C_in, C_pad), lambda n, t: (0, 0)),
                     pl.BlockSpec((1, C_pad), lambda n, t: (0, 0))]

    kernel = _make_kernel(TH=TH, R1=R1, R_IN=R_IN, W_out=W_out, C_in=C_in,
                          C_pad=C_pad, stride=s, H_out=H_out, has_proj=has_proj)

    # VMEM budget: double-buffered activation blocks + resident weights + slack.
    in_blk = Hp * W_in * C_in * 2
    out_blk = TH * W_out * C_pad * 4
    w_bytes = sum(int(o.size) * o.dtype.itemsize for o in operands[1:])
    vmem_limit = int(min(max(2 * (in_blk + out_blk) + w_bytes + (8 << 20), 16 << 20),
                         64 << 20))

    flops_tile = 2 * (R1 * W_out * 9 * C_in * C_pad
                      + 9 * TH * W_out * C_pad * C_pad
                      + (TH * W_out * C_in * C_pad if has_proj else 0))
    cost = pl.CostEstimate(
        flops=int(N * T * flops_tile),
        transcendentals=0,
        bytes_accessed=int(xpad.size * 2 + N * H_out * W_out * C_pad * 4 + w_bytes))

    out = pl.pallas_call(
        kernel,
        out_shape=jax.ShapeDtypeStruct((N, H_out, W_out, C_pad), jnp.float32),
        grid=(N, T),
        in_specs=in_specs,
        out_specs=pl.BlockSpec((1, TH, W_out, C_pad), lambda n, t: (n, t, 0, 0)),
        compiler_params=pltpu.CompilerParams(
            dimension_semantics=("parallel", "parallel"),
            vmem_limit_bytes=vmem_limit),
        cost_estimate=cost,
    )(*operands)

    return jnp.transpose(out[..., :C_out], (0, 3, 1, 2))  # back to NCHW


def reference_block(x, params, stride=1):
    """Pure-JAX reference (eval-mode BN, f32) for correctness checking."""
    def conv(y, w, s, p):
        return lax.conv_general_dilated(y, w, (s, s), [(p, p), (p, p)],
                                        dimension_numbers=("NCHW", "OIHW", "NCHW"))

    def bn(y, g, b, m, v):
        sh = (1, -1, 1, 1)
        return (y - m.reshape(sh)) / jnp.sqrt(v.reshape(sh) + EPS) * g.reshape(sh) + b.reshape(sh)

    C_in, C_out = x.shape[1], params["w1"].shape[0]
    has_proj = (stride != 1) or (C_in != C_out)
    out = jax.nn.relu(bn(conv(x, params["w1"], stride, 1), *params["bn1"]))
    out = bn(conv(out, params["w2"], 1, 1), *params["bn2"])
    skip = x
    if has_proj:
        skip = bn(conv(x, params["wsk"], stride, 0), *params["bnsk"])
    return jax.nn.relu(out + skip)


def _bn_params(k, c):
    k1, k2, k3, k4 = jax.random.split(k, 4)
    gamma = jax.random.uniform(k1, (c,), jnp.float32, 0.5, 1.5)
    beta = 0.1 * jax.random.normal(k2, (c,), jnp.float32)
    mean = 0.1 * jax.random.normal(k3, (c,), jnp.float32)
    var = jax.random.uniform(k4, (c,), jnp.float32, 0.5, 1.5)
    return gamma, beta, mean, var


def _make_params(key, c_in, c_out, with_proj):
    ks = jax.random.split(key, 6)
    p = {"w1": 0.2 * jax.random.normal(ks[0], (c_out, c_in, 3, 3), jnp.float32),
         "bn1": _bn_params(ks[1], c_out),
         "w2": 0.2 * jax.random.normal(ks[2], (c_out, c_out, 3, 3), jnp.float32),
         "bn2": _bn_params(ks[3], c_out)}
    if with_proj:
        p["wsk"] = 0.2 * jax.random.normal(ks[4], (c_out, c_in, 1, 1), jnp.float32)
        p["bnsk"] = _bn_params(ks[5], c_out)
    return p


def _check(name, x, params, stride):
    out = jax.block_until_ready(wave_residual_block(x, params, stride))
    ref = jax.block_until_ready(reference_block(x, params, stride))
    assert out.shape == ref.shape, (name, out.shape, ref.shape)
    ref_scale = float(jnp.max(jnp.abs(ref))) + 1e-6
    max_err = float(jnp.max(jnp.abs(out - ref)))
    rel_rms = float(jnp.sqrt(jnp.mean((out - ref) ** 2) /
                             (jnp.mean(ref ** 2) + 1e-12)))
    # bf16 MXU inputs (f32 accumulation) vs. pure-f32 reference -> loosened tol.
    assert max_err <= 0.05 * ref_scale + 0.05, (name, max_err, ref_scale)
    assert rel_rms <= 0.03, (name, rel_rms)


if __name__ == "__main__":
    root = jax.random.PRNGKey(0)
    kx1, kp1, kx2, kp2 = jax.random.split(root, 4)

    # Case 1: projection skip (C_in != C_out), stride 1.
    N, C_in, C_out, H, W = 2, 4, 8, 16, 16
    x1 = jax.random.normal(kx1, (N, C_in, H, W), jnp.float32)
    p1 = _make_params(kp1, C_in, C_out, with_proj=True)
    _check("proj", x1, p1, stride=1)

    # Case 2: identity skip (C_in == C_out), stride 1.
    x2 = jax.random.normal(kx2, (N, C_out, H, W), jnp.float32)
    p2 = _make_params(kp2, C_out, C_out, with_proj=False)
    _check("identity", x2, p2, stride=1)

    print("KERNEL_OK")
</pallas_src>

<mosaic_0001>
module attributes {stable_mosaic.version = 11 : i64} {
  func.func @kernel(%arg0: i32, %arg1: i32, %arg2: memref<1x20x18x4xbf16, #tpu.memory_space<vmem>>, %arg3: memref<36x128xbf16, #tpu.memory_space<vmem>>, %arg4: memref<1x128xf32, #tpu.memory_space<vmem>>, %arg5: memref<9x128x128xbf16, #tpu.memory_space<vmem>>, %arg6: memref<1x128xf32, #tpu.memory_space<vmem>>, %arg7: memref<4x128xbf16, #tpu.memory_space<vmem>>, %arg8: memref<1x128xf32, #tpu.memory_space<vmem>>, %arg9: memref<1x8x16x128xf32, #tpu.memory_space<vmem>>) attributes {dimension_semantics = [#tpu.dimension_semantics<parallel>, #tpu.dimension_semantics<parallel>], iteration_bounds = array<i64: 2, 2>, scalar_prefetch = 0 : i64, scratch_operands = 0 : i64, tpu.core_type = #tpu.core_type<tc>, window_params = [{transform_indices = @transform_0, window_bounds = array<i64: 1, 20, 18, 4>}, {pipeline_mode = #tpu.pipeline_mode<synchronous>, transform_indices = @transform_1, window_bounds = array<i64: 36, 128>}, {pipeline_mode = #tpu.pipeline_mode<synchronous>, transform_indices = @transform_2, window_bounds = array<i64: 1, 128>}, {pipeline_mode = #tpu.pipeline_mode<synchronous>, transform_indices = @transform_3, window_bounds = array<i64: 9, 128, 128>}, {pipeline_mode = #tpu.pipeline_mode<synchronous>, transform_indices = @transform_4, window_bounds = array<i64: 1, 128>}, {pipeline_mode = #tpu.pipeline_mode<synchronous>, transform_indices = @transform_5, window_bounds = array<i64: 4, 128>}, {pipeline_mode = #tpu.pipeline_mode<synchronous>, transform_indices = @transform_6, window_bounds = array<i64: 1, 128>}, {transform_indices = @transform_7, window_bounds = array<i64: 1, 8, 16, 128>}]} {
    %c8_i32 = arith.constant 8 : i32
    %0 = arith.muli %arg1, %c8_i32 : i32
    %c8_i32_0 = arith.constant 8 : i32
    %1 = arith.muli %arg1, %c8_i32_0 : i32
    %2 = tpu.assume_multiple %1, 8 : i32
    %c0 = arith.constant 0 : index
    %3 = arith.index_cast %2 : i32 to index
    %c0_1 = arith.constant 0 : index
    %c0_2 = arith.constant 0 : index
    %4 = vector.load %arg2[%c0, %3, %c0_1, %c0_2] : memref<1x20x18x4xbf16, #tpu.memory_space<vmem>>, vector<1x12x18x4xbf16>
    %5 = vector.shape_cast %4 : vector<1x12x18x4xbf16> to vector<12x18x4xbf16>
    %6 = arith.extf %5 : vector<12x18x4xbf16> to vector<12x18x4xf32>
    %7 = vector.extract_strided_slice %6 {offsets = [0, 0, 0], sizes = [10, 16, 4], strides = [1, 1, 1]} : vector<12x18x4xf32> to vector<10x16x4xf32>
    %8 = vector.extract_strided_slice %6 {offsets = [0, 1, 0], sizes = [10, 16, 4], strides = [1, 1, 1]} : vector<12x18x4xf32> to vector<10x16x4xf32>
    %9 = vector.extract_strided_slice %6 {offsets = [0, 2, 0], sizes = [10, 16, 4], strides = [1, 1, 1]} : vector<12x18x4xf32> to vector<10x16x4xf32>
    %10 = vector.extract_strided_slice %6 {offsets = [1, 0, 0], sizes = [10, 16, 4], strides = [1, 1, 1]} : vector<12x18x4xf32> to vector<10x16x4xf32>
    %11 = vector.extract_strided_slice %6 {offsets = [1, 1, 0], sizes = [10, 16, 4], strides = [1, 1, 1]} : vector<12x18x4xf32> to vector<10x16x4xf32>
    %12 = vector.extract_strided_slice %6 {offsets = [1, 2, 0], sizes = [10, 16, 4], strides = [1, 1, 1]} : vector<12x18x4xf32> to vector<10x16x4xf32>
    %13 = vector.extract_strided_slice %6 {offsets = [2, 0, 0], sizes = [10, 16, 4], strides = [1, 1, 1]} : vector<12x18x4xf32> to vector<10x16x4xf32>
    %14 = vector.extract_strided_slice %6 {offsets = [2, 1, 0], sizes = [10, 16, 4], strides = [1, 1, 1]} : vector<12x18x4xf32> to vector<10x16x4xf32>
    %15 = vector.extract_strided_slice %6 {offsets = [2, 2, 0], sizes = [10, 16, 4], strides = [1, 1, 1]} : vector<12x18x4xf32> to vector<10x16x4xf32>
    %16 = tpu.concatenate %7, %8, %9, %10, %11, %12, %13, %14, %15 in 2 : vector<10x16x4xf32>, vector<10x16x4xf32>, vector<10x16x4xf32>, vector<10x16x4xf32>, vector<10x16x4xf32>, vector<10x16x4xf32>, vector<10x16x4xf32>, vector<10x16x4xf32>, vector<10x16x4xf32> -> vector<10x16x36xf32>
    %17 = vector.shape_cast %16 : vector<10x16x36xf32> to vector<160x36xf32>
    %18 = arith.truncf %17 : vector<160x36xf32> to vector<160x36xbf16>
    %c0_3 = arith.constant 0 : index
    %c0_4 = arith.constant 0 : index
    %19 = vector.load %arg3[%c0_3, %c0_4] : memref<36x128xbf16, #tpu.memory_space<vmem>>, vector<36x128xbf16>
    %cst = arith.constant dense<0.000000e+00> : vector<160x128xf32>
    %20 = tpu.matmul %18, %19, %cst {dimension_numbers = #tpu.dot_dimension_numbers<[1], [0], [0], [1], [0, 0, 1, 1], [], []>} : vector<160x36xbf16>, vector<36x128xbf16>, vector<160x128xf32> -> vector<160x128xf32>
    %c0_5 = arith.constant 0 : index
    %c0_6 = arith.constant 0 : index
    %21 = vector.load %arg4[%c0_5, %c0_6] : memref<1x128xf32, #tpu.memory_space<vmem>>, vector<1x128xf32>
    %22 = vector.broadcast %21 : vector<1x128xf32> to vector<160x128xf32>
    %23 = arith.addf %20, %22 : vector<160x128xf32>
    %cst_7 = arith.constant 0.000000e+00 : f32
    %24 = vector.broadcast %cst_7 : f32 to vector<160x128xf32>
    %25 = arith.maximumf %23, %24 : vector<160x128xf32>
    %26 = vector.shape_cast %25 : vector<160x128xf32> to vector<10x16x128xf32>
    %c1_i32 = arith.constant 1 : i32
    %27 = arith.subi %0, %c1_i32 : i32
    %28 = tpu.iota {dimensions = array<i32: 0>} : vector<10x16x128xi32>
    %29 = vector.broadcast %27 : i32 to vector<10x16x128xi32>
    %30 = arith.addi %29, %28 : vector<10x16x128xi32>
    %c0_i32 = arith.constant 0 : i32
    %31 = vector.broadcast %c0_i32 : i32 to vector<10x16x128xi32>
    %32 = arith.cmpi sge, %30, %31 : vector<10x16x128xi32>
    %c16_i32 = arith.constant 16 : i32
    %33 = vector.broadcast %c16_i32 : i32 to vector<10x16x128xi32>
    %34 = arith.cmpi slt, %30, %33 : vector<10x16x128xi32>
    %35 = arith.andi %32, %34 : vector<10x16x128xi1>
    %cst_8 = arith.constant 0.000000e+00 : f32
    %36 = vector.broadcast %cst_8 : f32 to vector<10x16x128xf32>
    %37 = arith.select %35, %26, %36 : vector<10x16x128xi1>, vector<10x16x128xf32>
    %cst_9 = arith.constant 0.000000e+00 : f32
    %38 = vector.broadcast %cst_9 : f32 to vector<10x1x128xf32>
    %39 = tpu.concatenate %38, %37, %38 in 1 : vector<10x1x128xf32>, vector<10x16x128xf32>, vector<10x1x128xf32> -> vector<10x18x128xf32>
    %cst_10 = arith.constant 0.000000e+00 : f32
    %40 = vector.broadcast %cst_10 : f32 to vector<128x128xf32>
    %41 = vector.extract_strided_slice %39 {offsets = [0, 0, 0], sizes = [8, 16, 128], strides = [1, 1, 1]} : vector<10x18x128xf32> to vector<8x16x128xf32>
    %42 = vector.shape_cast %41 : vector<8x16x128xf32> to vector<128x128xf32>
    %43 = arith.truncf %42 : vector<128x128xf32> to vector<128x128xbf16>
    %c0_11 = arith.constant 0 : index
    %c0_12 = arith.constant 0 : index
    %c0_13 = arith.constant 0 : index
    %44 = vector.load %arg5[%c0_11, %c0_12, %c0_13] : memref<9x128x128xbf16, #tpu.memory_space<vmem>>, vector<1x128x128xbf16>
    %45 = vector.shape_cast %44 : vector<1x128x128xbf16> to vector<128x128xbf16>
    %cst_14 = arith.constant dense<0.000000e+00> : vector<128x128xf32>
    %46 = tpu.matmul %43, %45, %cst_14 {dimension_numbers = #tpu.dot_dimension_numbers<[1], [0], [0], [1], [0, 0, 1, 1], [], []>} : vector<128x128xbf16>, vector<128x128xbf16>, vector<128x128xf32> -> vector<128x128xf32>
    %47 = arith.addf %40, %46 : vector<128x128xf32>
    %48 = vector.extract_strided_slice %39 {offsets = [0, 1, 0], sizes = [8, 16, 128], strides = [1, 1, 1]} : vector<10x18x128xf32> to vector<8x16x128xf32>
    %49 = vector.shape_cast %48 : vector<8x16x128xf32> to vector<128x128xf32>
    %50 = arith.truncf %49 : vector<128x128xf32> to vector<128x128xbf16>
    %c1 = arith.constant 1 : index
    %c0_15 = arith.constant 0 : index
    %c0_16 = arith.constant 0 : index
    %51 = vector.load %arg5[%c1, %c0_15, %c0_16] : memref<9x128x128xbf16, #tpu.memory_space<vmem>>, vector<1x128x128xbf16>
    %52 = vector.shape_cast %51 : vector<1x128x128xbf16> to vector<128x128xbf16>
    %cst_17 = arith.constant dense<0.000000e+00> : vector<128x128xf32>
    %53 = tpu.matmul %50, %52, %cst_17 {dimension_numbers = #tpu.dot_dimension_numbers<[1], [0], [0], [1], [0, 0, 1, 1], [], []>} : vector<128x128xbf16>, vector<128x128xbf16>, vector<128x128xf32> -> vector<128x128xf32>
    %54 = arith.addf %47, %53 : vector<128x128xf32>
    %55 = vector.extract_strided_slice %39 {offsets = [0, 2, 0], sizes = [8, 16, 128], strides = [1, 1, 1]} : vector<10x18x128xf32> to vector<8x16x128xf32>
    %56 = vector.shape_cast %55 : vector<8x16x128xf32> to vector<128x128xf32>
    %57 = arith.truncf %56 : vector<128x128xf32> to vector<128x128xbf16>
    %c2 = arith.constant 2 : index
    %c0_18 = arith.constant 0 : index
    %c0_19 = arith.constant 0 : index
    %58 = vector.load %arg5[%c2, %c0_18, %c0_19] : memref<9x128x128xbf16, #tpu.memory_space<vmem>>, vector<1x128x128xbf16>
    %59 = vector.shape_cast %58 : vector<1x128x128xbf16> to vector<128x128xbf16>
    %cst_20 = arith.constant dense<0.000000e+00> : vector<128x128xf32>
    %60 = tpu.matmul %57, %59, %cst_20 {dimension_numbers = #tpu.dot_dimension_numbers<[1], [0], [0], [1], [0, 0, 1, 1], [], []>} : vector<128x128xbf16>, vector<128x128xbf16>, vector<128x128xf32> -> vector<128x128xf32>
    %61 = arith.addf %54, %60 : vector<128x128xf32>
    %62 = vector.extract_strided_slice %39 {offsets = [1, 0, 0], sizes = [8, 16, 128], strides = [1, 1, 1]} : vector<10x18x128xf32> to vector<8x16x128xf32>
    %63 = vector.shape_cast %62 : vector<8x16x128xf32> to vector<128x128xf32>
    %64 = arith.truncf %63 : vector<128x128xf32> to vector<128x128xbf16>
    %c3 = arith.constant 3 : index
    %c0_21 = arith.constant 0 : index
    %c0_22 = arith.constant 0 : index
    %65 = vector.load %arg5[%c3, %c0_21, %c0_22] : memref<9x128x128xbf16, #tpu.memory_space<vmem>>, vector<1x128x128xbf16>
    %66 = vector.shape_cast %65 : vector<1x128x128xbf16> to vector<128x128xbf16>
    %cst_23 = arith.constant dense<0.000000e+00> : vector<128x128xf32>
    %67 = tpu.matmul %64, %66, %cst_23 {dimension_numbers = #tpu.dot_dimension_numbers<[1], [0], [0], [1], [0, 0, 1, 1], [], []>} : vector<128x128xbf16>, vector<128x128xbf16>, vector<128x128xf32> -> vector<128x128xf32>
    %68 = arith.addf %61, %67 : vector<128x128xf32>
    %69 = vector.extract_strided_slice %39 {offsets = [1, 1, 0], sizes = [8, 16, 128], strides = [1, 1, 1]} : vector<10x18x128xf32> to vector<8x16x128xf32>
    %70 = vector.shape_cast %69 : vector<8x16x128xf32> to vector<128x128xf32>
    %71 = arith.truncf %70 : vector<128x128xf32> to vector<128x128xbf16>
    %c4 = arith.constant 4 : index
    %c0_24 = arith.constant 0 : index
    %c0_25 = arith.constant 0 : index
    %72 = vector.load %arg5[%c4, %c0_24, %c0_25] : memref<9x128x128xbf16, #tpu.memory_space<vmem>>, vector<1x128x128xbf16>
    %73 = vector.shape_cast %72 : vector<1x128x128xbf16> to vector<128x128xbf16>
    %cst_26 = arith.constant dense<0.000000e+00> : vector<128x128xf32>
    %74 = tpu.matmul %71, %73, %cst_26 {dimension_numbers = #tpu.dot_dimension_numbers<[1], [0], [0], [1], [0, 0, 1, 1], [], []>} : vector<128x128xbf16>, vector<128x128xbf16>, vector<128x128xf32> -> vector<128x128xf32>
    %75 = arith.addf %68, %74 : vector<128x128xf32>
    %76 = vector.extract_strided_slice %39 {offsets = [1, 2, 0], sizes = [8, 16, 128], strides = [1, 1, 1]} : vector<10x18x128xf32> to vector<8x16x128xf32>
    %77 = vector.shape_cast %76 : vector<8x16x128xf32> to vector<128x128xf32>
    %78 = arith.truncf %77 : vector<128x128xf32> to vector<128x128xbf16>
    %c5 = arith.constant 5 : index
    %c0_27 = arith.constant 0 : index
    %c0_28 = arith.constant 0 : index
    %79 = vector.load %arg5[%c5, %c0_27, %c0_28] : memref<9x128x128xbf16, #tpu.memory_space<vmem>>, vector<1x128x128xbf16>
    %80 = vector.shape_cast %79 : vector<1x128x128xbf16> to vector<128x128xbf16>
    %cst_29 = arith.constant dense<0.000000e+00> : vector<128x128xf32>
    %81 = tpu.matmul %78, %80, %cst_29 {dimension_numbers = #tpu.dot_dimension_numbers<[1], [0], [0], [1], [0, 0, 1, 1], [], []>} : vector<128x128xbf16>, vector<128x128xbf16>, vector<128x128xf32> -> vector<128x128xf32>
    %82 = arith.addf %75, %81 : vector<128x128xf32>
    %83 = vector.extract_strided_slice %39 {offsets = [2, 0, 0], sizes = [8, 16, 128], strides = [1, 1, 1]} : vector<10x18x128xf32> to vector<8x16x128xf32>
    %84 = vector.shape_cast %83 : vector<8x16x128xf32> to vector<128x128xf32>
    %85 = arith.truncf %84 : vector<128x128xf32> to vector<128x128xbf16>
    %c6 = arith.constant 6 : index
    %c0_30 = arith.constant 0 : index
    %c0_31 = arith.constant 0 : index
    %86 = vector.load %arg5[%c6, %c0_30, %c0_31] : memref<9x128x128xbf16, #tpu.memory_space<vmem>>, vector<1x128x128xbf16>
    %87 = vector.shape_cast %86 : vector<1x128x128xbf16> to vector<128x128xbf16>
    %cst_32 = arith.constant dense<0.000000e+00> : vector<128x128xf32>
    %88 = tpu.matmul %85, %87, %cst_32 {dimension_numbers = #tpu.dot_dimension_numbers<[1], [0], [0], [1], [0, 0, 1, 1], [], []>} : vector<128x128xbf16>, vector<128x128xbf16>, vector<128x128xf32> -> vector<128x128xf32>
    %89 = arith.addf %82, %88 : vector<128x128xf32>
    %90 = vector.extract_strided_slice %39 {offsets = [2, 1, 0], sizes = [8, 16, 128], strides = [1, 1, 1]} : vector<10x18x128xf32> to vector<8x16x128xf32>
    %91 = vector.shape_cast %90 : vector<8x16x128xf32> to vector<128x128xf32>
    %92 = arith.truncf %91 : vector<128x128xf32> to vector<128x128xbf16>
    %c7 = arith.constant 7 : index
    %c0_33 = arith.constant 0 : index
    %c0_34 = arith.constant 0 : index
    %93 = vector.load %arg5[%c7, %c0_33, %c0_34] : memref<9x128x128xbf16, #tpu.memory_space<vmem>>, vector<1x128x128xbf16>
    %94 = vector.shape_cast %93 : vector<1x128x128xbf16> to vector<128x128xbf16>
    %cst_35 = arith.constant dense<0.000000e+00> : vector<128x128xf32>
    %95 = tpu.matmul %92, %94, %cst_35 {dimension_numbers = #tpu.dot_dimension_numbers<[1], [0], [0], [1], [0, 0, 1, 1], [], []>} : vector<128x128xbf16>, vector<128x128xbf16>, vector<128x128xf32> -> vector<128x128xf32>
    %96 = arith.addf %89, %95 : vector<128x128xf32>
    %97 = vector.extract_strided_slice %39 {offsets = [2, 2, 0], sizes = [8, 16, 128], strides = [1, 1, 1]} : vector<10x18x128xf32> to vector<8x16x128xf32>
    %98 = vector.shape_cast %97 : vector<8x16x128xf32> to vector<128x128xf32>
    %99 = arith.truncf %98 : vector<128x128xf32> to vector<128x128xbf16>
    %c8 = arith.constant 8 : index
    %c0_36 = arith.constant 0 : index
    %c0_37 = arith.constant 0 : index
    %100 = vector.load %arg5[%c8, %c0_36, %c0_37] : memref<9x128x128xbf16, #tpu.memory_space<vmem>>, vector<1x128x128xbf16>
    %101 = vector.shape_cast %100 : vector<1x128x128xbf16> to vector<128x128xbf16>
    %cst_38 = arith.constant dense<0.000000e+00> : vector<128x128xf32>
    %102 = tpu.matmul %99, %101, %cst_38 {dimension_numbers = #tpu.dot_dimension_numbers<[1], [0], [0], [1], [0, 0, 1, 1], [], []>} : vector<128x128xbf16>, vector<128x128xbf16>, vector<128x128xf32> -> vector<128x128xf32>
    %103 = arith.addf %96, %102 : vector<128x128xf32>
    %c0_39 = arith.constant 0 : index
    %c0_40 = arith.constant 0 : index
    %104 = vector.load %arg6[%c0_39, %c0_40] : memref<1x128xf32, #tpu.memory_space<vmem>>, vector<1x128xf32>
    %105 = vector.broadcast %104 : vector<1x128xf32> to vector<128x128xf32>
    %106 = arith.addf %103, %105 : vector<128x128xf32>
    %107 = vector.extract_strided_slice %6 {offsets = [2, 1, 0], sizes = [8, 16, 4], strides = [1, 1, 1]} : vector<12x18x4xf32> to vector<8x16x4xf32>
    %108 = vector.shape_cast %107 : vector<8x16x4xf32> to vector<128x4xf32>
    %109 = arith.truncf %108 : vector<128x4xf32> to vector<128x4xbf16>
    %c0_41 = arith.constant 0 : index
    %c0_42 = arith.constant 0 : index
    %110 = vector.load %arg7[%c0_41, %c0_42] : memref<4x128xbf16, #tpu.memory_space<vmem>>, vector<4x128xbf16>
    %cst_43 = arith.constant dense<0.000000e+00> : vector<128x128xf32>
    %111 = tpu.matmul %109, %110, %cst_43 {dimension_numbers = #tpu.dot_dimension_numbers<[1], [0], [0], [1], [0, 0, 1, 1], [], []>} : vector<128x4xbf16>, vector<4x128xbf16>, vector<128x128xf32> -> vector<128x128xf32>
    %c0_44 = arith.constant 0 : index
    %c0_45 = arith.constant 0 : index
    %112 = vector.load %arg8[%c0_44, %c0_45] : memref<1x128xf32, #tpu.memory_space<vmem>>, vector<1x128xf32>
    %113 = vector.broadcast %112 : vector<1x128xf32> to vector<128x128xf32>
    %114 = arith.addf %111, %113 : vector<128x128xf32>
    %115 = arith.addf %106, %114 : vector<128x128xf32>
    %cst_46 = arith.constant 0.000000e+00 : f32
    %116 = vector.broadcast %cst_46 : f32 to vector<128x128xf32>
    %117 = arith.maximumf %115, %116 : vector<128x128xf32>
    %118 = vector.shape_cast %117 : vector<128x128xf32> to vector<1x8x16x128xf32>
    %c0_47 = arith.constant 0 : index
    %c0_48 = arith.constant 0 : index
    %c0_49 = arith.constant 0 : index
    %c0_50 = arith.constant 0 : index
    %119 = vector.load %arg9[%c0_47, %c0_48, %c0_49, %c0_50] : memref<1x8x16x128xf32, #tpu.memory_space<vmem>>, vector<1x8x16x128xf32>
    tpu.vector_store %arg9[%c0_47, %c0_48, %c0_49, %c0_50], %118 {strides = array<i32>} : memref<1x8x16x128xf32, #tpu.memory_space<vmem>>, vector<1x8x16x128xf32>,
    return
  }
  func.func @transform_0(%arg0: i32, %arg1: i32) -> (i32, i32, i32, i32) {
    %c0_i32 = arith.constant 0 : i32
    %c0_i32_0 = arith.constant 0 : i32
    %c0_i32_1 = arith.constant 0 : i32
    %c0_i32_2 = arith.constant 0 : i32
    return %arg0, %c0_i32, %c0_i32_0, %c0_i32_1 : i32, i32, i32, i32
  }
  func.func @transform_1(%arg0: i32, %arg1: i32) -> (i32, i32) {
    %c0_i32 = arith.constant 0 : i32
    %c0_i32_0 = arith.constant 0 : i32
    %c0_i32_1 = arith.constant 0 : i32
    return %c0_i32, %c0_i32_0 : i32, i32
  }
  func.func @transform_2(%arg0: i32, %arg1: i32) -> (i32, i32) {
    %c0_i32 = arith.constant 0 : i32
    %c0_i32_0 = arith.constant 0 : i32
    %c0_i32_1 = arith.constant 0 : i32
    return %c0_i32, %c0_i32_0 : i32, i32
  }
  func.func @transform_3(%arg0: i32, %arg1: i32) -> (i32, i32, i32) {
    %c0_i32 = arith.constant 0 : i32
    %c0_i32_0 = arith.constant 0 : i32
    %c0_i32_1 = arith.constant 0 : i32
    %c0_i32_2 = arith.constant 0 : i32
    return %c0_i32, %c0_i32_0, %c0_i32_1 : i32, i32, i32
  }
  func.func @transform_4(%arg0: i32, %arg1: i32) -> (i32, i32) {
    %c0_i32 = arith.constant 0 : i32
    %c0_i32_0 = arith.constant 0 : i32
    %c0_i32_1 = arith.constant 0 : i32
    return %c0_i32, %c0_i32_0 : i32, i32
  }
  func.func @transform_5(%arg0: i32, %arg1: i32) -> (i32, i32) {
    %c0_i32 = arith.constant 0 : i32
    %c0_i32_0 = arith.constant 0 : i32
    %c0_i32_1 = arith.constant 0 : i32
    return %c0_i32, %c0_i32_0 : i32, i32
  }
  func.func @transform_6(%arg0: i32, %arg1: i32) -> (i32, i32) {
    %c0_i32 = arith.constant 0 : i32
    %c0_i32_0 = arith.constant 0 : i32
    %c0_i32_1 = arith.constant 0 : i32
    return %c0_i32, %c0_i32_0 : i32, i32
  }
  func.func @transform_7(%arg0: i32, %arg1: i32) -> (i32, i32, i32, i32) {
    %c0_i32 = arith.constant 0 : i32
    %c0_i32_0 = arith.constant 0 : i32
    %c0_i32_1 = arith.constant 0 : i32
    return %arg0, %arg1, %c0_i32, %c0_i32_0 : i32, i32, i32, i32
  }
}

</mosaic_0001>

<bundles_post_ra>
// kernel: tpu_custom_call.1
= control target key start
LH: loop header
LB: loop body
LE: loop exit
PB: predicated region body
PF: predicated region fallthrough
CT: control target
= control target key end

     0   :  { %12 = vsyncpa [#allocation3], 0  ;;  %s6667_s0 = inlined_call_operand.vmem [shape: bf16[2,20,18,4], index: 0, kind: input, shape index: {}]   ;;  %s6668_s1 = inlined_call_operand.vmem [shape: bf16[36,128], index: 1, kind: input, shape index: {}]   ;;  %s6669_s2 = inlined_call_operand.vmem [shape: f32[1,128], index: 2, kind: input, shape index: {}]   ;;  %s6670_s3 = inlined_call_operand.hbm [shape: bf16[9,128,128], index: 3, kind: input, shape index: {}]   ;;  %s6671_s4 = inlined_call_operand.vmem [shape: f32[1,128], index: 4, kind: input, shape index: {}]   ;;  %s6672_s5 = inlined_call_operand.vmem [shape: bf16[4,128], index: 5, kind: input, shape index: {}]   ;;  %s6673_s6 = inlined_call_operand.vmem [shape: f32[1,128], index: 6, kind: input, shape index: {}]   ;;  %s6674_s7 = inlined_call_operand.hbm [shape: f32[2,16,16,128], index: 7, kind: output, shape index: {}]  }
   0x1   :  { %13 = vsyncpa [#allocation4], 0 }
   0x2   :  { %15 = vsyncpa [#allocation4 + $0x1], 0  ;;  %s5337_s24 = smov 0   ;;  %s5339_s25 = smov 0  }
   0x3   :  { %s5341_s26 = smov 0   ;;  %s5343_s27 = smov 0  }
   0x4   :  { %s5345_s28 = smov 0   ;;  %s5347_s29 = smov 0  }
   0x5   :  { %s5349_s30 = smov 0   ;;  %s5351_s8 = smov 0  }
   0x6 LB: > { %s3650_s9 = sadd.s32 4294967295, %s5281_s8   ;;  %s3651_s10 = sadd.s32 4294967294, %s5281_s8   ;;  %s5281_s8 = sphi %s5351_s8, %s21_s8   ;;  %s5277_s30 = sphi %s5349_s30, %s6743_s30   ;;  %s5273_s29 = sphi %s5347_s29, %s6742_s29   ;;  %s5269_s28 = sphi %s5345_s28, %s6741_s28   ;;  %s5265_s27 = sphi %s5343_s27, %s6740_s27   ;;  %s5261_s26 = sphi %s5341_s26, %s6739_s26   ;;  %s5257_s25 = sphi %s5339_s25, %s6738_s25   ;;  %s5253_s24 = sphi %s5337_s24, %s6737_s24  }
   0x7   : > { %s30_s11 = sadd.s32 1, %s5273_s29  ;;  %s33_s12 = sadd.s32 1, %s5277_s30 }
   0x8   : > { %p31_p0 = scmp.ge.s32.totalorder %s30_s11, 2  ;;  %s194_s13 = sadd.s32 1, %s5261_s26 }
   0x9   : > { %p204_p1 = scmp.ne.s32.totalorder %s5261_s26, %s5257_s25  ;;  %p205_p2 = scmp.eq.s32.totalorder %s3650_s9, 3 }
   0xa   : > { %s6745_s11 = smov (%p31_p0, %s30_s11), 0  ;;  %s6747_s12 = smov (!%p31_p0, %s33_s12), %s5277_s30 }
   0xb   : > { %6690 = sst [smem:[#allocation8_spill]] %s6745_s11  ;;  %s190_s14 = ssub.s32 %s5273_s29, %s6745_s11 }
   0xc   : > { %p5389_p3 = por %p205_p2, %p204_p1  ;;  %p35_p4 = scmp.ge.s32.totalorder %s6747_s12, 2 }
   0xd   : > { %p210_p5 = scmp.ne.s32.totalorder %s5257_s25, %s5253_s24  ;;  %p211_p6 = scmp.eq.s32.totalorder %s3651_s10, 3 }
   0xe   : > { %s6691_s15 = scalar_select %p5389_p3, 1, 0 }
   0xf   : > { %p3652_p7 = scmp.ge.s32.totalorder %s5281_s8, 1  ;;  %s6749_s12 = smov (%p35_p4, %s6747_s12), 0 }
  0x10   : > { %6692 = sst [smem:[#allocation9_spill]] %s6749_s12  ;;  %p5398_p8 = por %p211_p6, %p210_p5 }
  0x11   : > { %p218_p9 = scmp.lt.s32.totalorder %s5281_s8, 5  ;;  %s189_s17 = ssub.s32 %s5277_s30, %s6749_s12 }
  0x12   : > { %s6693_s16 = scalar_select %p5398_p8, 1, 0 }
  0x13   : > { %s191_s18 = sor.u32 %s190_s14, %s189_s17  ;;  %p5405_p10 = pnand %p3652_p7, %p218_p9 }
  0x14   : > { %p192_p11 = scmp.eq.s32.totalorder %s191_s18, 0  ;;  %p5409_p12 = scmp.eq.s32.totalorder %s3650_s9, 0 }
  0x15   : > { %s6694_s19 = scalar_select %p5405_p10, 1, 0 }
  0x16   : > { %s6695_s20 = scalar_select %p5409_p12, 1, 0 }
  0x17   : > { %p4592_p13 = pneg %p5405_p10  ;;  %s5283_s22 = smov [#allocation2]  }
  0x18   : > { %s5416_s21 = scalar_select %p192_p11, %s5261_s26, %s194_s13  }
  0x19   : > { %s236_s23 = sshll.u32 %s5283_s22, 4  ;;  %p5420_p0 = pnand %p5409_p12, %p4592_p13  ;;  %s237_s23 = int_to_ptr.vmem [resolvable:$true] %s236_s23 }
  0x1a   : > { %s5155_s9 = scalar_lea.hbm %s6670_s3, 9216 }
  0x1b   : > { %p5156_p1 = scmp.ne.s32.totalorder %s6670_s3, %s5155_s9  ;;  %p5157_p2 = pneg %p5420_p0 }
  0x1c   : > { %p5162_p6 = scmp.lt.u32.totalorder %s5155_s9, %s6670_s3 }
  0x1d   : > { %p5158_p4 = pnand %p5157_p2, %p5156_p1 }
  0x1f   : > { %p5159_p5 = pneg %p5158_p4 }
  0x21   : > { %p5164_p7 = pnand %p5162_p6, %p5159_p5 }
  0x23   : > { %5167 = shalt.err (!%p5164_p7)
}
  0x24   : > { %s5168_s11 = scalar_lea.vmem %s237_s23, 9216  ;;  %p5176_p8 = scmp.lt.s32.totalorder %s237_s23, %s237_s23 }
  0x25   : > { %p5169_p9 = scmp.ne.s32.totalorder %s237_s23, %s5168_s11  ;;  %p5177_p3 = scmp.lt.s32.totalorder %s5168_s11, %s5168_s11 }
  0x27   : > { %p5171_p11 = pnand %p5169_p9, %p5157_p2  ;;  %p5178_p12 = por %p5177_p3, %p5176_p8 }
  0x29   : > { %p5172_p13 = pneg %p5171_p11 }
  0x2b   : > { %p5179_p10 = pnand %p5178_p12, %p5172_p13 }
  0x2d   : > { %5182 = shalt.err (!%p5179_p10)
}
  0x2e   : > { %s5284_s12 = smov 64   ;;  %s5285_s14 = smov 4  }
  0x2f   : > { %4595 = dma.hbm_to_vmem [thread:$0]  (!%p5420_p0), %s6670_s3, 9216, %s237_s23, [#allocation3], %s5284_s12, %s5284_s12, %s5285_s14  }
  0x30   : > { %p6697_p1 = scmp.ne.s32.totalorder %s6694_s19, 0 }
  0x32   : > { %269 = sbr.rel (%p6697_p1) target bundleno = 954 (0x3ba), region = 48 }
  0x39   : > { %p6698_p4 = scmp.ne.s32.totalorder %s6695_s20, 0 }
  0x3b   : > { %5244 = dma.done.wait (%p6698_p4), [#allocation3], 9216  }
  0x3c   : > { %5246 = vsyncadd (%p6698_p4), [#allocation3], 4294958080  ;;  %p301_p3 = scmp.lt.s32.totalorder %s5269_s28, 1  ;;  %s3862_s9 = smul.u32 96, %s5265_s27  ;;  %vm525_vm0 = vcmask 1045504   ;;  %vm414_vm1 = vcmask 1046528  }
  0x3d   : > { %s5286_s19 = smov 12   ;;  %s5287_s20 = smov 8   ;;  %v5080_v60 = vld [vmem:[%s6668_s1] sm:$0xff]   ;;  %v5081_v62 = vld [vmem:[%s6668_s1 + $0x8] sm:$0xff]   ;;  %vm1258_vm2 = vcmask 1041408   ;;  %vm1022_vm3 = vcmask 31744  }
  0x3e   : > { %s302_s11 = scalar_select %p301_p3, %s5269_s28, 1  ;;  %4059 = vmatprep.subr.bf16.mxu0 %v5080_v60  ;;  %vm1043_vm4 = vcmask 64512   ;;  %vm1064_vm5 = vcmask 97280   ;;  %vm1085_vm6 = vcmask 130048   ;;  %vm1106_vm7 = vcmask 162816  }
  0x3f   : > { %s5288_s14 = smov 4   ;;  %4060 = vmatpush3.bf16.msra.mxu0 %v5080_v60  ;;  %s5290_s13 = smov 20   ;;  %vm1127_vm8 = vcmask 195584   ;;  %vm1148_vm9 = vcmask 228352   ;;  %vm1169_vm10 = vcmask 261120   ;;  %vm1227_vm11 = vcmask 293888  }
  0x40   : > { %s4585_s10 = smul.u32 240, %s302_s11  ;;  %s5289_s11 = smov 16   ;;  %4061 = vmatprep.subr.bf16.mxu0 %v5081_v62 }
  0x41   : > { %s5291_s22 = smov 24   ;;  %s5293_s17 = smov 32  }
  0x42   : > { %s305_s23 = scalar_lea.vmem %s6667_s0, %s4585_s10  ;;  %p6733_p10 = scmp.ne.s32.totalorder %s6691_s15, 0 }
  0x43   : > { %s5452_s12 = scalar_lea.vmem %s305_s23, %s3862_s9  ;;  %4062 = vmatpush3.bf16.msra.mxu0 %v5081_v62  ;;  %s5292_s23 = smov 28  }
  0x44   : > { %v3888_v0 = vld [vmem:[%s5452_s12 + $0x18] sm:$0xff]   ;;  %v315_v1 = vld [vmem:[%s5452_s12 + $0xc] sm:$0xff]   ;;  %v3865_v2 = vld [vmem:[%s5452_s12] sm:$0xff]  }
  0x45   : > { %v5457_v3 = vunpack.c.l.bf16 %v3888_v0  ;;  %v5459_v4 = vunpack.c.h.bf16 %v3888_v0  ;;  %v5461_v5 = vunpack.c.l.bf16 %v315_v1  ;;  %v5463_v6 = vunpack.c.h.bf16 %v315_v1  ;;  %v314_v7 = vld [vmem:[%s5452_s12 + $0x8] sm:$0x1]  ;;  %v317_v8 = vld [vmem:[%s5452_s12 + $0x14] sm:$0x1]  ;;  %v320_v29 = vld [vmem:[%s5452_s12 + $0x20] sm:$0x1] }
  0x46   : > { %v5467_v9 = vunpack.c.l.bf16 %v3865_v2  ;;  %v5469_v10 = vunpack.c.h.bf16 %v3865_v2  ;;  %v350_v11 = vunpack.c.l.bf16 %v314_v7  ;;  %v353_v12 = vunpack.c.l.bf16 %v317_v8  ;;  %v321_v41 = vld [vmem:[%s5452_s12 + $0x24] sm:$0xff]   ;;  %v323_v45 = vld [vmem:[%s5452_s12 + $0x2c] sm:$0x1] }
  0x47   : > { %v5473_v13 = vpack.i.bf16 %v5459_v4, %v5457_v3  ;;  %v4680_v14 = vpack.i.bf16 %v5463_v6, %v5461_v5  ;;  %v531_v15 = vrot.slane %v5461_v5, 2  ;;  %v532_v16 = vrot.slane %v5463_v6, 2 }
  0x48   : > { %v526_v17 = vrot.slane %v5467_v9, 2  ;;  %v527_v18 = vrot.slane %v5469_v10, 2  ;;  %v529_v19 = vrot.slane %v350_v11, 2  ;;  %v415_v20 = vrot.slane %v5467_v9, 1 }
  0x49   : > { %4686 = vrot.lane.b32.xlu1 %v5473_v13, %s5286_s19  ;;  %4681 = vrot.lane.b32.xlu0 %v4680_v14, %s5286_s19  ;;  %v416_v21 = vrot.slane %v5469_v10, 1  ;;  %v418_v22 = vrot.slane %v350_v11, 1  ;;  %v533_v23 = vsel %vm525_vm0, %v531_v15, %v532_v16  ;;  %v534_v24 = vrot.slane %v353_v12, 2  ;;  %v326_v14 = vld [vmem:[%s5452_s12 + $0x38] sm:$0x1] }
  0x4a   : > { %v528_v25 = vsel %vm525_vm0, %v526_v17, %v527_v18  ;;  %v530_v26 = vsel %vm525_vm0, %v527_v18, %v529_v19  ;;  %v420_v27 = vrot.slane %v5461_v5, 1  ;;  %v421_v28 = vrot.slane %v5463_v6, 1 }
  0x4b   : > { %v4700_v30 = vpack.i.bf16 %v530_v26, %v528_v25  ;;  %v417_v31 = vsel %vm414_vm1, %v415_v20, %v416_v21  ;;  %v419_v32 = vsel %vm414_vm1, %v416_v21, %v418_v22  ;;  %v535_v33 = vsel %vm525_vm0, %v532_v16, %v534_v24  ;;  %v327_v25 = vld [vmem:[%s5452_s12 + $0x3c] sm:$0xff]  }
  0x4c   : > { %v4690_v34 = vpack.i.bf16 %v419_v32, %v417_v31  ;;  %v422_v35 = vsel %vm414_vm1, %v420_v27, %v421_v28  ;;  %v423_v36 = vrot.slane %v353_v12, 1  ;;  %v4705_v37 = vpack.i.bf16 %v535_v33, %v533_v23  ;;  %v3889_v12 = vld [vmem:[%s5452_s12 + $0x30] sm:$0xff]  }
  0x4d   : > { %4701 = vrot.lane.b32.xlu1 %v4700_v30, %s5287_s20  ;;  %v356_v38 = vunpack.c.l.bf16 %v320_v29  ;;  %v425_v39 = vrot.slane %v5457_v3, 1  ;;  %v426_v40 = vrot.slane %v5459_v4, 1  ;;  %v536_v43 = vrot.slane %v5457_v3, 2  ;;  %v329_v30 = vld [vmem:[%s5452_s12 + $0x44] sm:$0x1] }
  0x4e   : > { %4691 = vrot.lane.b32.xlu0 %v4690_v34, %s5288_s14  ;;  %v424_v42 = vsel %vm414_vm1, %v421_v28, %v423_v36  ;;  %v537_v44 = vrot.slane %v5459_v4, 2  ;;  %v5508_v50 = vunpack.c.l.bf16 %v321_v41  ;;  %v5510_v51 = vunpack.c.h.bf16 %v321_v41  ;;  %v5082_v41 = vld [vmem:[%s6668_s1 + $0x10] ss:$0 sps:$4 sm:$0x33]  }
  0x4f   : > { %v4695_v46 = vpack.i.bf16 %v424_v42, %v422_v35  ;;  %v5506_v47 = vsel %vm414_vm1, %v425_v39, %v426_v40  ;;  %v428_v48 = vrot.slane %v356_v38, 1  ;;  %v539_v49 = vrot.slane %v356_v38, 2  ;;  %v3890_v42 = vld [vmem:[%s5452_s12 + $0x48] sm:$0xff]   ;;  %4583 = vmatprep.subr.msk.bf16.mxu0 %vm1258_vm2, %v5082_v41 }
  0x50   : > { %v359_v53 = vunpack.c.l.bf16 %v323_v45  ;;  %v538_v55 = vsel %vm525_vm0, %v536_v43, %v537_v44  ;;  %v430_v57 = vrot.slane %v5508_v50, 1  ;;  %v431_v58 = vrot.slane %v5510_v51, 1 }
  0x51   : > { %4706 = vrot.lane.b32.xlu1 %v4705_v37, %s5287_s20  ;;  %v5514_v52 = vsel %vm414_vm1, %v426_v40, %v428_v48  ;;  %v540_v56 = vsel %vm525_vm0, %v537_v44, %v539_v49  ;;  %v4735_v63 = vpack.i.bf16 %v5510_v51, %v5508_v50  ;;  %v541_v7 = vrot.slane %v5508_v50, 2  ;;  %v332_v44 = vld [vmem:[%s5452_s12 + $0x50] sm:$0x1] }
  0x52   : > { %4696 = vrot.lane.b32.xlu0 %v4695_v46, %s5288_s14  ;;  %v4715_v54 = vpack.i.bf16 %v5514_v52, %v5506_v47  ;;  %v433_v59 = vrot.slane %v359_v53, 1  ;;  %v4725_v61 = vpack.i.bf16 %v540_v56, %v538_v55  ;;  %v5536_v0 = vsel %vm414_vm1, %v430_v57, %v431_v58 }
  0x53   : > { %v542_v8 = vrot.slane %v5510_v51, 2  ;;  %v544_v11 = vrot.slane %v359_v53, 2  ;;  %v5557_v17 = vunpack.c.h.bf16 %v3889_v12  ;;  %v362_v18 = vunpack.c.l.bf16 %v326_v14 }
  0x54   : > { %v5539_v1 = vsel %vm414_vm1, %v431_v58, %v433_v59  ;;  %v5581_v32 = vunpack.c.l.bf16 %v327_v25  ;;  %v5586_v35 = vunpack.c.h.bf16 %v327_v25  ;;  %v365_v36 = vunpack.c.l.bf16 %v329_v30 }
  0x55   : > { %4716 = vrot.lane.b32.xlu1 %v4715_v54, %s5289_s11  ;;  %v4745_v2 = vpack.i.bf16 %v5539_v1, %v5536_v0  ;;  %v543_v15 = vsel %vm525_vm0, %v541_v7, %v542_v8  ;;  %v545_v16 = vsel %vm525_vm0, %v542_v8, %v544_v11  ;;  %v436_v21 = vrot.slane %v5557_v17, 1 }
  0x56   : > { %4711 = vrot.lane.b32.xlu0 %v4695_v46, %s5289_s11  ;;  %v4760_v19 = vpack.i.bf16 %v545_v16, %v543_v15  ;;  %v438_v22 = vrot.slane %v362_v18, 1  ;;  %v547_v28 = vrot.slane %v5557_v17, 2  ;;  %v549_v29 = vrot.slane %v362_v18, 2  ;;  %v333_v16 = vld [vmem:[%s5452_s12 + $0x54] sm:$0xff]   ;;  %v335_v18 = vld [vmem:[%s5452_s12 + $0x5c] sm:$0x1] }
  0x57   : > { %v440_v38 = vrot.slane %v5581_v32, 1  ;;  %v441_v39 = vrot.slane %v5586_v35, 1  ;;  %v443_v40 = vrot.slane %v365_v36, 1  ;;  %v4815_v43 = vpack.i.bf16 %v5586_v35, %v5581_v32 }
  0x58   : > { %v5574_v27 = vsel %vm414_vm1, %v436_v21, %v438_v22  ;;  %v550_v34 = vsel %vm525_vm0, %v547_v28, %v549_v29  ;;  %v5607_v48 = vunpack.c.l.bf16 %v3890_v42  ;;  %v5609_v49 = vunpack.c.h.bf16 %v3890_v42  ;;  %v3891_v42 = vld [vmem:[%s5452_s12 + $0x60] sm:$0xff]  }
  0x59   : > { %4726 = vrot.lane.b32.xlu1 %v4725_v61, %s5290_s13  ;;  %v5602_v45 = vsel %vm414_vm1, %v440_v38, %v441_v39  ;;  %v5605_v46 = vsel %vm414_vm1, %v441_v39, %v443_v40  ;;  %v368_v53 = vunpack.c.l.bf16 %v332_v44  ;;  %v551_v55 = vrot.slane %v5581_v32, 2 }
  0x5a   : > { %4721 = vrot.lane.b32.xlu0 %v4705_v37, %s5290_s13  ;;  %6699 = vst [vmem:[#allocation10_spill] sm:$0xff] %v5605_v46  ;;  %v1260_v56 = vsel %vm1258_vm2, %v5082_v41, 0  ;;  %v552_v57 = vrot.slane %v5586_v35, 2  ;;  %v554_v58 = vrot.slane %v365_v36, 2  ;;  %v445_v59 = vrot.slane %v5607_v48, 1 }
  0x5b   : > { %4064 = vmatpush3.bf16.msra.mxu0 %v1260_v56  ;;  %v446_v60 = vrot.slane %v5609_v49, 1  ;;  %v556_v62 = vrot.slane %v5607_v48, 2  ;;  %v4865_v8 = vpack.i.bf16 %v5609_v49, %v5607_v48  ;;  %v557_v14 = vrot.slane %v5609_v49, 2 }
  0x5c   : > { %v559_v15 = vrot.slane %v368_v53, 2 }
  0x5d   : > { %4736 = vrot.lane.b32.xlu1 %v4735_v63, %s5291_s22  ;;  %v5635_v11 = vsel %vm414_vm1, %v445_v59, %v446_v60 }
  0x5e   : > { %4731 = vrot.lane.b32.xlu0 %v5473_v13, %s5291_s22  ;;  %v5555_v13 = vunpack.c.l.bf16 %v3889_v12  ;;  %6700 = vst [vmem:[#allocation11_spill] sm:$0xff] %v5635_v11  ;;  %v560_v22 = vsel %vm525_vm0, %v557_v14, %v559_v15 }
  0x60   : > { %v435_v20 = vrot.slane %v5555_v13, 1  ;;  %v4785_v23 = vpack.i.bf16 %v5557_v17, %v5555_v13  ;;  %v546_v24 = vrot.slane %v5555_v13, 2 }
  0x61   : > { %4746 = vrot.lane.b32.xlu1 %v4745_v2, %s5292_s23 }
  0x62   : > { %4741 = vrot.lane.b32.xlu0 %v4715_v54, %s5292_s23  ;;  %v5571_v26 = vsel %vm414_vm1, %v435_v20, %v436_v21  ;;  %v548_v33 = vsel %vm525_vm0, %v546_v24, %v547_v28  ;;  %v5646_v20 = vunpack.c.l.bf16 %v333_v16  ;;  %v558_v21 = vsel %vm525_vm0, %v556_v62, %v557_v14 }
  0x63   : > { %v4795_v31 = vpack.i.bf16 %v5574_v27, %v5571_v26  ;;  %v4805_v37 = vpack.i.bf16 %v550_v34, %v548_v33  ;;  %v371_v24 = vunpack.c.l.bf16 %v335_v18  ;;  %v4885_v25 = vpack.i.bf16 %v560_v22, %v558_v21 }
  0x64   : > { %v450_v28 = vrot.slane %v5646_v20, 1 }
  0x65   : > { %4756 = vrot.lane.b32.xlu1 %v4715_v54, %s5288_s14  ;;  %v4825_v54 = vpack.i.bf16 %v5605_v46, %v5602_v45  ;;  %v453_v30 = vrot.slane %v371_v24, 1  ;;  %v564_v39 = vrot.slane %v371_v24, 2 }
  0x66   : > { %4751 = vrot.lane.b32.xlu0 %v4725_v61, %s5293_s17 }
  0x69   : > { %4766 = vrot.lane.b32.xlu1 %v4745_v2, %s5288_s14 }
  0x6a   : > { %4761 = vrot.lane.b32.xlu0 %v4760_v19, %s5293_s17 }
  0x6d   : > { %4776 = vrot.lane.b32.xlu1 %v4760_v19, %s5287_s20 }
  0x6e   : > { %4771 = vrot.lane.b32.xlu0 %v4725_v61, %s5287_s20  ;;  %v448_v61 = vrot.slane %v368_v53, 1  ;;  %v5681_v53 = vunpack.c.l.bf16 %v3891_v42 }
  0x70   : > { %v5638_v12 = vsel %vm414_vm1, %v446_v60, %v448_v61  ;;  %v455_v56 = vrot.slane %v5681_v53, 1  ;;  %v566_v60 = vrot.slane %v5681_v53, 2 }
  0x71   : > { %4786 = vrot.lane.b32.xlu1 %v4785_v23, %s5286_s19  ;;  %6701 = vst [vmem:[#allocation12_spill] sm:$0xff] %v5638_v12 }
  0x72   : > { %4781 = vrot.lane.b32.xlu0 %v4735_v63, %s5286_s19  ;;  %v553_v63 = vsel %vm525_vm0, %v551_v55, %v552_v57 }
  0x75   : > { %4796 = vrot.lane.b32.xlu1 %v4795_v31, %s5289_s11 }
  0x76   : > { %4791 = vrot.lane.b32.xlu0 %v4745_v2, %s5289_s11  ;;  %v555_v2 = vsel %vm525_vm0, %v552_v57, %v554_v58 }
  0x77   : > { %v4840_v7 = vpack.i.bf16 %v555_v2, %v553_v63 }
  0x79   : > { %4806 = vrot.lane.b32.xlu1 %v4805_v37, %s5290_s13 }
  0x7a   : > { %4801 = vrot.lane.b32.xlu0 %v4760_v19, %s5290_s13  ;;  %v4875_v19 = vpack.i.bf16 %v5638_v12, %v5635_v11 }
  0x7d   : > { %4816 = vrot.lane.b32.xlu1 %v4815_v43, %s5291_s22 }
  0x7e   : > { %4811 = vrot.lane.b32.xlu0 %v4785_v23, %s5291_s22  ;;  %v5651_v23 = vunpack.c.h.bf16 %v333_v16 }
  0x80   : > { %v451_v29 = vrot.slane %v5651_v23, 1  ;;  %v562_v38 = vrot.slane %v5651_v23, 2 }
  0x81   : > { %4826 = vrot.lane.b32.xlu1 %v4825_v54, %s5292_s23 }
  0x82   : > { %4821 = vrot.lane.b32.xlu0 %v4795_v31, %s5292_s23  ;;  %v5662_v33 = vsel %vm414_vm1, %v450_v28, %v451_v29  ;;  %v5665_v34 = vsel %vm414_vm1, %v451_v29, %v453_v30  ;;  %v565_v41 = vsel %vm525_vm0, %v562_v38, %v564_v39 }
  0x83   : > { %6702 = vst [vmem:[#allocation13_spill] sm:$0xff] %v5662_v33  ;;  %6703 = vst [vmem:[#allocation14_spill] sm:$0xff] %v5665_v34  ;;  %v4905_v36 = vpack.i.bf16 %v5665_v34, %v5662_v33 }
  0x85   : > { %4836 = vrot.lane.b32.xlu1 %v4795_v31, %s5288_s14  ;;  %v4895_v31 = vpack.i.bf16 %v5651_v23, %v5646_v20 }
  0x86   : > { %4831 = vrot.lane.b32.xlu0 %v4805_v37, %s5293_s17 }
  0x89   : > { %4846 = vrot.lane.b32.xlu1 %v4825_v54, %s5288_s14 }
  0x8a   : > { %4841 = vrot.lane.b32.xlu0 %v4840_v7, %s5293_s17 }
  0x8d   : > { %4856 = vrot.lane.b32.xlu1 %v4840_v7, %s5287_s20 }
  0x8e   : > { %4851 = vrot.lane.b32.xlu0 %v4805_v37, %s5287_s20  ;;  %v561_v37 = vrot.slane %v5646_v20, 2 }
  0x90   : > { %v563_v40 = vsel %vm525_vm0, %v561_v37, %v562_v38 }
  0x91   : > { %4866 = vrot.lane.b32.xlu1 %v4865_v8, %s5286_s19  ;;  %v4920_v44 = vpack.i.bf16 %v565_v41, %v563_v40 }
  0x92   : > { %4861 = vrot.lane.b32.xlu0 %v4815_v43, %s5286_s19  ;;  %v338_v43 = vld [vmem:[%s5452_s12 + $0x68] sm:$0x1] }
  0x93   : > { %v374_v55 = vunpack.c.l.bf16 %v338_v43  ;;  %v3892_v43 = vld [vmem:[%s5452_s12 + $0x78] sm:$0xff]  }
  0x95   : > { %4876 = vrot.lane.b32.xlu1 %v4875_v19, %s5289_s11  ;;  %v458_v58 = vrot.slane %v374_v55, 1  ;;  %v569_v2 = vrot.slane %v374_v55, 2  ;;  %v344_v55 = vld [vmem:[%s5452_s12 + $0x80] sm:$0x1] }
  0x96   : > { %4871 = vrot.lane.b32.xlu0 %v4825_v54, %s5289_s11  ;;  %v5683_v54 = vunpack.c.h.bf16 %v3891_v42 }
  0x98   : > { %v456_v57 = vrot.slane %v5683_v54, 1  ;;  %v4945_v59 = vpack.i.bf16 %v5683_v54, %v5681_v53  ;;  %v567_v63 = vrot.slane %v5683_v54, 2 }
  0x99   : > { %4886 = vrot.lane.b32.xlu1 %v4885_v25, %s5290_s13 }
  0x9a   : > { %4881 = vrot.lane.b32.xlu0 %v4840_v7, %s5290_s13  ;;  %v5695_v61 = vsel %vm414_vm1, %v455_v56, %v456_v57  ;;  %v5698_v62 = vsel %vm414_vm1, %v456_v57, %v458_v58  ;;  %v339_v7 = vld [vmem:[%s5452_s12 + $0x6c] sm:$0xff]   ;;  %v568_v16 = vsel %vm525_vm0, %v566_v60, %v567_v63  ;;  %v570_v18 = vsel %vm525_vm0, %v567_v63, %v569_v2 }
  0x9b   : > { %6704 = vst [vmem:[#allocation15_spill] sm:$0xff] %v5695_v61  ;;  %6705 = vst [vmem:[#allocation16_spill] sm:$0xff] %v5698_v62  ;;  %v4955_v14 = vpack.i.bf16 %v5698_v62, %v5695_v61  ;;  %v5706_v15 = vunpack.c.l.bf16 %v339_v7  ;;  %v5714_v22 = vpack.i.bf16 %v570_v18, %v568_v16  ;;  %v3886_v58 = vunpack.c.l.bf16 %v3892_v43 }
  0x9c   : > { %v380_v63 = vunpack.c.l.bf16 %v344_v55 }
  0x9d   : > { %4896 = vrot.lane.b32.xlu1 %v4895_v31, %s5291_s22  ;;  %v460_v24 = vrot.slane %v5706_v15, 1  ;;  %v571_v39 = vrot.slane %v5706_v15, 2  ;;  %v699_v16 = vrot.slane %v3886_v58, 1 }
  0x9e   : > { %4891 = vrot.lane.b32.xlu0 %v4865_v8, %s5291_s22  ;;  %v341_v8 = vld [vmem:[%s5452_s12 + $0x74] sm:$0x1] }
  0x9f   : > { %v377_v21 = vunpack.c.l.bf16 %v341_v8 }
  0xa1   : > { %4906 = vrot.lane.b32.xlu1 %v4905_v36, %s5292_s23  ;;  %v463_v28 = vrot.slane %v377_v21, 1  ;;  %v574_v41 = vrot.slane %v377_v21, 2  ;;  %v764_v21 = vrot.slane %v3886_v58, 2 }
  0xa2   : > { %4901 = vrot.lane.b32.xlu0 %v4875_v19, %s5292_s23 }
  0xa5   : > { %4916 = vrot.lane.b32.xlu1 %v4875_v19, %s5288_s14  ;;  %v5711_v19 = vunpack.c.h.bf16 %v339_v7  ;;  %v345_v7 = vld [vmem:[%s5452_s12 + $0x84] sm:$0xff]  }
  0xa6   : > { %4911 = vrot.lane.b32.xlu0 %v4885_v25, %s5293_s17 }
  0xa7   : > { %v5723_v29 = vpack.i.bf16 %v5711_v19, %v5706_v15  ;;  %v572_v40 = vrot.slane %v5711_v19, 2 }
  0xa9   : > { %4926 = vrot.lane.b32.xlu1 %v4905_v36, %s5288_s14  ;;  %v573_v56 = vsel %vm525_vm0, %v571_v39, %v572_v40  ;;  %v575_v57 = vsel %vm525_vm0, %v572_v40, %v574_v41  ;;  %v702_v39 = vrot.slane %v380_v63, 1  ;;  %v767_v40 = vrot.slane %v380_v63, 2 }
  0xaa   : > { %4921 = vrot.lane.b32.xlu0 %v4920_v44, %s5293_s17  ;;  %v5758_v8 = vpack.i.bf16 %v575_v57, %v573_v56  ;;  %v5765_v41 = vunpack.c.l.bf16 %v345_v7 }
  0xac   : > { %v892_v34 = vrot.slane %v5765_v41, 1  ;;  %v957_v33 = vrot.slane %v5765_v41, 2 }
  0xad   : > { %4936 = vrot.lane.b32.xlu1 %v4920_v44, %s5287_s20 }
  0xae   : > { %4931 = vrot.lane.b32.xlu0 %v4885_v25, %s5287_s20  ;;  %v461_v25 = vrot.slane %v5711_v19, 1 }
  0xb0   : > { %v5727_v30 = vsel %vm414_vm1, %v460_v24, %v461_v25 }
  0xb1   : > { %4946 = vrot.lane.b32.xlu1 %v4945_v59, %s5286_s19  ;;  %6706 = vst [vmem:[#allocation17_spill] sm:$0xff] %v5727_v30 }
  0xb2   : > { %4941 = vrot.lane.b32.xlu0 %v4895_v31, %s5286_s19  ;;  %v5730_v31 = vsel %vm414_vm1, %v461_v25, %v463_v28  ;;  %v347_v25 = vld [vmem:[%s5452_s12 + $0x8c] sm:$0x1]  ;;  %s3659_s12 = sshll.u32 %s5265_s27, 3 }
  0xb3   : > { %6707 = vst [vmem:[#allocation18_spill] sm:$0xff] %v5730_v31  ;;  %v5740_v38 = vpack.i.bf16 %v5730_v31, %v5727_v30  ;;  %v383_v56 = vunpack.c.l.bf16 %v347_v25 }
  0xb5   : > { %4956 = vrot.lane.b32.xlu1 %v4955_v14, %s5289_s11 }
  0xb6   : > { %4951 = vrot.lane.b32.xlu0 %v4905_v36, %s5289_s11 }
  0xb9   : > { %4966 = vrot.lane.b32.xlu1 %v5714_v22, %s5290_s13 }
  0xba   : > { %4961 = vrot.lane.b32.xlu0 %v4920_v44, %s5290_s13 }
  0xbb   : > { %v5732_v36 = vpop.permute.xlu1 %4686  ;;  %v5734_v37 = vpop.permute.xlu0 %4681 }
  0xbd   : > { %4976 = vrot.lane.b32.xlu1 %v5723_v29, %s5291_s22 }
  0xbe   : > { %4971 = vrot.lane.b32.xlu0 %v4945_v59, %s5291_s22  ;;  %v3887_v59 = vunpack.c.h.bf16 %v3892_v43 }
  0xbf   : > { %v5745_v42 = vpop.permute.xlu1 %4701 }
  0xc0   : > { %v4692_v44 = vpop.permute.xlu0 %4691  ;;  %v700_v18 = vrot.slane %v3887_v59, 1  ;;  %v765_v24 = vrot.slane %v3887_v59, 2  ;;  %v5773_v55 = vpack.i.bf16 %v3887_v59, %v3886_v58 }
  0xc1   : > { %4986 = vrot.lane.b32.xlu1 %v5740_v38, %s5292_s23  ;;  %v4694_v57 = vunpack.i.h.bf16 %v4692_v44  ;;  %v4693_v31 = vunpack.i.l.bf16 %v4692_v44 }
  0xc2   : > { %4981 = vrot.lane.b32.xlu0 %v4955_v14, %s5292_s23  ;;  %v701_v63 = vsel %vm414_vm1, %v699_v16, %v700_v18  ;;  %v766_v30 = vsel %vm525_vm0, %v764_v21, %v765_v24  ;;  %v768_v61 = vsel %vm525_vm0, %v765_v24, %v767_v40  ;;  %v4704_v16 = vunpack.i.h.bf16 %v5745_v42 }
  0xc3   : > { %v5754_v60 = vpop.permute.xlu1 %4706  ;;  %v4703_v21 = vunpack.i.l.bf16 %v5745_v42  ;;  %v5801_v42 = vpack.i.bf16 %v768_v61, %v766_v30  ;;  %v5816_v30 = vrot.slane %v383_v56, 2 }
  0xc4   : > { %v4697_v2 = vpop.permute.xlu0 %4696  ;;  %v4709_v12 = vunpack.i.h.bf16 %v5754_v60  ;;  %v4708_v11 = vunpack.i.l.bf16 %v5754_v60 }
  0xc5   : > { %4996 = vrot.lane.b32.xlu1 %v4955_v14, %s5288_s14  ;;  %v5769_v14 = vunpack.c.h.bf16 %v345_v7  ;;  %v703_v7 = vsel %vm414_vm1, %v700_v18, %v702_v39  ;;  %v4699_v58 = vunpack.i.h.bf16 %v4697_v2  ;;  %v4698_v59 = vunpack.i.l.bf16 %v4697_v2 }
  0xc6   : > { %4991 = vrot.lane.b32.xlu0 %v5714_v22, %s5293_s17  ;;  %v895_v18 = vrot.slane %v383_v56, 1  ;;  %v1024_v2 = vsel %vm1022_vm3, %v5469_v10, %v4694_v57  ;;  %v1023_v39 = vsel %vm1022_vm3, %v5467_v9, %v4693_v31  ;;  %v5799_v40 = vpack.i.bf16 %v703_v7, %v701_v63 }
  0xc7   : > { %v5763_v28 = vpop.permute.xlu1 %4716  ;;  %v893_v44 = vrot.slane %v5769_v14, 1  ;;  %v958_v24 = vrot.slane %v5769_v14, 2  ;;  %v5055_v10 = vpack.i.bf16 %v5769_v14, %v5765_v41  ;;  %v1026_v9 = vsel %vm1022_vm3, %v5463_v6, %v4699_v58 }
  0xc8   : > { %v5767_v43 = vpop.permute.xlu0 %4711  ;;  %v1045_v60 = vsel %vm1043_vm4, %v1024_v2, %v4704_v16  ;;  %v1044_v57 = vsel %vm1043_vm4, %v1023_v39, %v4703_v21  ;;  %v4689_v6 = vunpack.i.h.bf16 %v5732_v36  ;;  %v4684_v56 = vunpack.i.h.bf16 %v5734_v37 }
  0xc9   : > { %5006 = vrot.lane.b32.xlu1 %v5740_v38, %s5288_s14  ;;  %v5814_v61 = vsel %vm414_vm1, %v892_v34, %v893_v44  ;;  %v5823_v63 = vsel %vm414_vm1, %v893_v44, %v895_v18  ;;  %v4688_v34 = vunpack.i.l.bf16 %v5732_v36  ;;  %v4683_v7 = vunpack.i.l.bf16 %v5734_v37  ;;  %s3863_s14 = sshll.u32 %s5265_s27, 4 }
  0xca   : > { %5001 = vrot.lane.b32.xlu0 %v5758_v8, %s5293_s17  ;;  %v1047_v58 = vsel %vm1043_vm4, %v1026_v9, %v4709_v12  ;;  %v4714_v44 = vunpack.i.h.bf16 %v5767_v43  ;;  %v1066_v36 = vsel %vm1064_vm5, %v1045_v60, %v4684_v56  ;;  %v4718_v12 = vunpack.i.l.bf16 %v5763_v28 }
  0xcb   : > { %v5779_v62 = vpop.permute.xlu1 %4726  ;;  %v1065_v21 = vsel %vm1064_vm5, %v1044_v57, %v4683_v7  ;;  %v1068_v9 = vsel %vm1064_vm5, %v1047_v58, %v4689_v6 }
  0xcc   : > { %v5784_v25 = vpop.permute.xlu0 %4721  ;;  %v1087_v57 = vsel %vm1085_vm6, %v1066_v36, %v4714_v44 }
  0xcd   : > { %5016 = vrot.lane.b32.xlu1 %v5758_v8, %s5287_s20  ;;  %v4724_v18 = vunpack.i.h.bf16 %v5784_v25  ;;  %v4723_v37 = vunpack.i.l.bf16 %v5784_v25 }
  0xce   : > { %5011 = vrot.lane.b32.xlu0 %v5714_v22, %s5287_s20  ;;  %v1025_v22 = vsel %vm1022_vm3, %v5461_v5, %v4698_v59  ;;  %v5828_v5 = vsel %vm525_vm0, %v957_v33, %v958_v24  ;;  %v4713_v33 = vunpack.i.l.bf16 %v5767_v43 }
  0xcf   : > { %v5805_v46 = vpop.permute.xlu1 %4736  ;;  %v1046_v59 = vsel %vm1043_vm4, %v1025_v22, %v4708_v11 }
  0xd0   : > { %v4732_v31 = vpop.permute.xlu0 %4731  ;;  %v1067_v43 = vsel %vm1064_vm5, %v1046_v59, %v4688_v34  ;;  %v1086_v25 = vsel %vm1085_vm6, %v1065_v21, %v4713_v33  ;;  %v1108_v34 = vsel %vm1106_vm7, %v1087_v57, %v4724_v18  ;;  %v4739_v6 = vunpack.i.h.bf16 %v5805_v46 }
  0xd1   : > { %5026 = vrot.lane.b32.xlu1 %v5773_v55, %s5286_s19  ;;  %v4734_v11 = vunpack.i.h.bf16 %v4732_v31  ;;  %v4733_v39 = vunpack.i.l.bf16 %v4732_v31  ;;  %v4728_v31 = vunpack.i.l.bf16 %v5779_v62  ;;  %v1107_v7 = vsel %vm1106_vm7, %v1086_v25, %v4723_v37 }
  0xd2   : > { %5021 = vrot.lane.b32.xlu0 %v5723_v29, %s5286_s19  ;;  %v4719_v29 = vunpack.i.h.bf16 %v5763_v28  ;;  %v4729_v28 = vunpack.i.h.bf16 %v5779_v62  ;;  %v4738_v58 = vunpack.i.l.bf16 %v5805_v46  ;;  %v1088_v46 = vsel %vm1085_vm6, %v1067_v43, %v4718_v12  ;;  %s3676_s19 = sadd.s32 4294967295, %s3659_s12 }
  0xd3   : > { %v4747_v16 = vpop.permute.xlu1 %4746  ;;  %v1129_v33 = vsel %vm1127_vm8, %v1108_v34, %v4734_v11  ;;  %v1109_v57 = vsel %vm1106_vm7, %v1088_v46, %v4728_v31 }
  0xd4   : > { %v4742_v2 = vpop.permute.xlu0 %4741  ;;  %v4749_v62 = vunpack.i.h.bf16 %v4747_v16  ;;  %v4748_v36 = vunpack.i.l.bf16 %v4747_v16 }
  0xd5   : > { %5036 = vrot.lane.b32.xlu1 %v5799_v40, %s5289_s11  ;;  %v4744_v22 = vunpack.i.h.bf16 %v4742_v2  ;;  %v4743_v60 = vunpack.i.l.bf16 %v4742_v2  ;;  %v1089_v2 = vsel %vm1085_vm6, %v1068_v9, %v4719_v29 }
  0xd6   : > { %5031 = vrot.lane.b32.xlu0 %v5740_v38, %s5289_s11  ;;  %v1128_v38 = vsel %vm1127_vm8, %v1107_v7, %v4733_v39  ;;  %v1110_v16 = vsel %vm1106_vm7, %v1089_v2, %v4729_v28  ;;  %s3858_s11 = sshll.u32 %s5269_s28, 5 }
  0xd7   : > { %v5856_v56 = vpop.permute.xlu1 %4756  ;;  %v1149_v18 = vsel %vm1148_vm9, %v1128_v38, %v4743_v60  ;;  %v1150_v37 = vsel %vm1148_vm9, %v1129_v33, %v4744_v22  ;;  %v1130_v22 = vsel %vm1127_vm8, %v1109_v57, %v4738_v58  ;;  %v1131_v12 = vsel %vm1127_vm8, %v1110_v16, %v4739_v6  ;;  %v5084_v58 = vld [vmem:[#allocation2 + $0x48] sm:$0xff]   ;;  %v5086_v38 = vld [vmem:[#allocation2 + $0x58] sm:$0xff]   ;;  %s3557_s10 = sadd.s32 %s3863_s14, %s3858_s11 }
  0xd8   : > { %v4752_v59 = vpop.permute.xlu0 %4751  ;;  %v1151_v9 = vsel %vm1148_vm9, %v1130_v22, %v4748_v36  ;;  %v1152_v60 = vsel %vm1148_vm9, %v1131_v12, %v4749_v62  ;;  %v4759_v62 = vunpack.i.h.bf16 %v5856_v56  ;;  %v4758_v36 = vunpack.i.l.bf16 %v5856_v56  ;;  %s3859_s28 = sshll.u32 %s3557_s10, 7 }
  0xd9   : > { %v4754_v44 = vunpack.i.h.bf16 %v4752_v59  ;;  %v4753_v21 = vunpack.i.l.bf16 %v4752_v59  ;;  %5046 = vrot.lane.b32.xlu1 %v5801_v42, %s5290_s13 }
  0xda   : > { %5041 = vrot.lane.b32.xlu0 %v5758_v8, %s5290_s13  ;;  %v5065_v8 = vpack.i.bf16 %v5823_v63, %v5814_v61  ;;  %v961_v61 = vsel %vm525_vm0, %v958_v24, %v5816_v30  ;;  %v5085_v30 = vld [vmem:[#allocation2 + $0x50] sm:$0xff]   ;;  %v1028_v56 = vsel %vm1022_vm3, %v5459_v4, %v4759_v62 }
  0xdb   : > { %v4767_v39 = vpop.permute.xlu1 %4766  ;;  %v1170_v11 = vsel %vm1169_vm10, %v1149_v18, %v4753_v21  ;;  %v1171_v25 = vsel %vm1169_vm10, %v1150_v37, %v4754_v44 }
  0xdc   : > { %v4762_v7 = vpop.permute.xlu0 %4761  ;;  %v1190_v34 = vpack.c.bf16 %v1171_v25, %v1170_v11  ;;  %v4769_v44 = vunpack.i.h.bf16 %v4767_v39  ;;  %v4768_v21 = vunpack.i.l.bf16 %v4767_v39 }
  0xdd   : > { %v4764_v43 = vunpack.i.h.bf16 %v4762_v7  ;;  %v4763_v29 = vunpack.i.l.bf16 %v4762_v7  ;;  %5056 = vrot.lane.b32.xlu1 %v5055_v10, %s5291_s22  ;;  %v5083_v10 = vld [vmem:[#allocation2 + $0x40] sm:$0xff]  }
  0xde   : > { %5051 = vrot.lane.b32.xlu0 %v5773_v55, %s5291_s22  ;;  %4065 = vmatprep.mubr.msk.bf16.mxu0 %vm1227_vm11, %v1190_v34  ;;  %v5075_v55 = vpack.i.bf16 %v961_v61, %v5828_v5  ;;  %v1030_v16 = vsel %vm1022_vm3, %v5510_v51, %v4769_v44  ;;  %v1029_v7 = vsel %vm1022_vm3, %v5508_v50, %v4768_v21 }
  0xdf   : > { %v1172_v63 = vsel %vm1169_vm10, %v1151_v9, %v4763_v29  ;;  %v1173_v28 = vsel %vm1169_vm10, %v1152_v60, %v4764_v43  ;;  %v4777_v41 = vpop.permute.xlu1 %4776  ;;  %4085 = vmatprep.subr.bf16.mxu0 %v5083_v10 }
  0xe0   : > { %v1191_v31 = vpack.c.bf16 %v1173_v28, %v1172_v63  ;;  %v4772_v6 = vpop.permute.xlu0 %4771  ;;  %v4779_v18 = vunpack.i.h.bf16 %v4777_v41  ;;  %v4778_v37 = vunpack.i.l.bf16 %v4777_v41 }
  0xe1   : > { %5066 = vrot.lane.b32.xlu1 %v5065_v8, %s5292_s23  ;;  %v4773_v46 = vunpack.i.l.bf16 %v4772_v6  ;;  %v1027_v8 = vsel %vm1022_vm3, %v5457_v3, %v4758_v36 }
  0xe2   : > { %5061 = vrot.lane.b32.xlu0 %v5799_v40, %s5292_s23  ;;  %4066 = vmatmul.mubr.msk.bf16.vlgmr.msra.gmra.mrb[0].mxu0 %vm1227_vm11, %v1191_v31  ;;  %v1050_v22 = vsel %vm1043_vm4, %v1029_v7, %v4778_v37  ;;  %v1051_v12 = vsel %vm1043_vm4, %v1030_v16, %v4779_v18  ;;  %s6608_s23 = scalar_lea.hbm %s6674_s7, %s3859_s28 }
  0xe3   : > { %v4787_v14 = vpop.permute.xlu1 %4786  ;;  %4086 = vmatpush3.bf16.msra.mxu0 %v5083_v10  ;;  %v1048_v29 = vsel %vm1043_vm4, %v1027_v8, %v4773_v46 }
  0xe4   : > { %v4782_v24 = vpop.permute.xlu0 %4781  ;;  %4087 = vmatprep.subr.bf16.mxu0 %v5084_v58  ;;  %v4789_v11 = vunpack.i.h.bf16 %v4787_v14  ;;  %v4788_v25 = vunpack.i.l.bf16 %v4787_v14 }
  0xe5   : > { %5076 = vrot.lane.b32.xlu1 %v5075_v55, %s5293_s17  ;;  %v4784_v39 = vunpack.i.h.bf16 %v4782_v24  ;;  %v4783_v34 = vunpack.i.l.bf16 %v4782_v24 }
  0xe6   : > { %5071 = vrot.lane.b32.xlu0 %v5801_v42, %s5293_s17  ;;  %v4774_v42 = vunpack.i.h.bf16 %v4772_v6  ;;  %v1071_v50 = vsel %vm1064_vm5, %v1050_v22, %v4788_v25  ;;  %v1072_v61 = vsel %vm1064_vm5, %v1051_v12, %v4789_v11  ;;  %s298_s17 = sand.u32 1, %s5257_s25  }
  0xe7   : > { %v5903_v59 = vpop.permute.xlu1 %4796  ;;  %4088 = vmatpush3.bf16.msra.mxu0 %v5084_v58  ;;  %v1069_v3 = vsel %vm1064_vm5, %v1048_v29, %v4783_v34  ;;  %s3657_s12 = sshll.u32 %s298_s17, 7  ;;  %s6614_s18 = scalar_lea.sflag [#allocation4], %s298_s17 }
  0xe8   : > { %v4792_v5 = vpop.permute.xlu0 %4791  ;;  %4089 = vmatprep.subr.bf16.mxu0 %v5085_v30  ;;  %v1049_v43 = vsel %vm1043_vm4, %v1028_v56, %v4774_v42  ;;  %v4799_v6 = vunpack.i.h.bf16 %v5903_v59  ;;  %v4798_v58 = vunpack.i.l.bf16 %v5903_v59 }
  0xe9   : > { %v4794_v51 = vunpack.i.h.bf16 %v4792_v5  ;;  %v4793_v9 = vunpack.i.l.bf16 %v4792_v5  ;;  %v1070_v41 = vsel %vm1064_vm5, %v1049_v43, %v4784_v39 }
  0xea   : > { %v1092_v16 = vsel %vm1085_vm6, %v1071_v50, %v4798_v58  ;;  %v1093_v7 = vsel %vm1085_vm6, %v1072_v61, %v4799_v6 }
  0xeb   : > { %v5905_v33 = vpop.permute.xlu1 %4806  ;;  %4090 = vmatpush3.bf16.msra.mxu0 %v5085_v30  ;;  %v1090_v24 = vsel %vm1085_vm6, %v1069_v3, %v4793_v9  ;;  %v1091_v30 = vsel %vm1085_vm6, %v1070_v41, %v4794_v51 }
  0xec   : > { %v4802_v40 = vpop.permute.xlu0 %4801  ;;  %4091 = vmatprep.subr.bf16.mxu0 %v5086_v38  ;;  %v4809_v5 = vunpack.i.h.bf16 %v5905_v33 }
  0xed   : > { %v4804_v63 = vunpack.i.h.bf16 %v4802_v40  ;;  %v4803_v4 = vunpack.i.l.bf16 %v4802_v40 }
  0xee   : > { %v1114_v8 = vsel %vm1106_vm7, %v1093_v7, %v4809_v5 }
  0xef   : > { %v4817_v2 = vpop.permute.xlu1 %4816  ;;  %4092 = vmatpush3.bf16.msra.mxu0 %v5086_v38  ;;  %v4808_v38 = vunpack.i.l.bf16 %v5905_v33  ;;  %v1111_v44 = vsel %vm1106_vm7, %v1090_v24, %v4803_v4  ;;  %v1112_v21 = vsel %vm1106_vm7, %v1091_v30, %v4804_v63 }
  0xf0   : > { %v4812_v57 = vpop.permute.xlu0 %4811  ;;  %v4819_v62 = vunpack.i.h.bf16 %v4817_v2  ;;  %v4818_v36 = vunpack.i.l.bf16 %v4817_v2 }
  0xf1   : > { %v4814_v10 = vunpack.i.h.bf16 %v4812_v57  ;;  %v4813_v31 = vunpack.i.l.bf16 %v4812_v57  ;;  %v1113_v56 = vsel %vm1106_vm7, %v1092_v16, %v4808_v38 }
  0xf2   : > { %v1134_v43 = vsel %vm1127_vm8, %v1113_v56, %v4818_v36  ;;  %v1135_v29 = vsel %vm1127_vm8, %v1114_v8, %v4819_v62 }
  0xf3   : > { %v4827_v60 = vpop.permute.xlu1 %4826  ;;  %v1132_v59 = vsel %vm1127_vm8, %v1111_v44, %v4813_v31  ;;  %v1133_v37 = vsel %vm1127_vm8, %v1112_v21, %v4814_v10 }
  0xf4   : > { %v4822_v28 = vpop.permute.xlu0 %4821  ;;  %v4829_v11 = vunpack.i.h.bf16 %v4827_v60  ;;  %v4828_v25 = vunpack.i.l.bf16 %v4827_v60 }
  0xf5   : > { %v4824_v55 = vunpack.i.h.bf16 %v4822_v28  ;;  %v4823_v14 = vunpack.i.l.bf16 %v4822_v28 }
  0xf6   : > { %v1155_v60 = vsel %vm1148_vm9, %v1134_v43, %v4828_v25  ;;  %v1156_v50 = vsel %vm1148_vm9, %v1135_v29, %v4829_v11 }
  0xf7   : > { %v4837_v40 = vpop.permute.xlu1 %4836  ;;  %v1153_v57 = vsel %vm1148_vm9, %v1132_v59, %v4823_v14  ;;  %v1154_v33 = vsel %vm1148_vm9, %v1133_v37, %v4824_v55 }
  0xf8   : > { %v4832_v18 = vpop.permute.xlu0 %4831  ;;  %v4839_v30 = vunpack.i.h.bf16 %v4837_v40  ;;  %v4838_v5 = vunpack.i.l.bf16 %v4837_v40 }
  0xf9   : > { %v4834_v42 = vunpack.i.h.bf16 %v4832_v18  ;;  %v4833_v46 = vunpack.i.l.bf16 %v4832_v18 }
  0xfa   : > { %v1031_v40 = vsel %vm1022_vm3, %v5555_v13, %v4838_v5 }
  0xfb   : > { %v1174_v39 = vsel %vm1169_vm10, %v1153_v57, %v4833_v46  ;;  %v1175_v2 = vsel %vm1169_vm10, %v1154_v33, %v4834_v42  ;;  %v4847_v34 = vpop.permute.xlu1 %4846  ;;  %v1032_v57 = vsel %vm1022_vm3, %v5557_v17, %v4839_v30 }
  0xfc   : > { %v1192_v22 = vpack.c.bf16 %v1175_v2, %v1174_v39  ;;  %v4842_v12 = vpop.permute.xlu0 %4841  ;;  %v4849_v14 = vunpack.i.h.bf16 %v4847_v34  ;;  %v4848_v24 = vunpack.i.l.bf16 %v4847_v34 }
  0xfd   : > { %v4844_v51 = vunpack.i.h.bf16 %v4842_v12  ;;  %v4843_v9 = vunpack.i.l.bf16 %v4842_v12 }
  0xfe   : > { %4069 = vmatprep.mubr.msk.bf16.mxu0 %vm1227_vm11, %v1192_v22  ;;  %v1034_v42 = vsel %vm1022_vm3, %v5586_v35, %v4849_v14  ;;  %v1033_v46 = vsel %vm1022_vm3, %v5581_v32, %v4848_v24 }
  0xff   : > { %v1177_v61 = vsel %vm1169_vm10, %v1156_v50, %v4844_v51  ;;  %v1176_v63 = vsel %vm1169_vm10, %v1155_v60, %v4843_v9  ;;  %v4857_v4 = vpop.permute.xlu1 %4856 }
 0x100   : > { %v1193_v28 = vpack.c.bf16 %v1177_v61, %v1176_v63  ;;  %v4852_v3 = vpop.permute.xlu0 %4851  ;;  %v4859_v38 = vunpack.i.h.bf16 %v4857_v4  ;;  %v4858_v44 = vunpack.i.l.bf16 %v4857_v4 }
 0x101   : > { %v4854_v21 = vunpack.i.h.bf16 %v4852_v3  ;;  %v4853_v62 = vunpack.i.l.bf16 %v4852_v3 }
 0x102   : > { %4070 = vmatmul.mubr.msk.bf16.gmra.mrb[4].mxu0 %vm1227_vm11, %v1193_v28  ;;  %v1054_v33 = vsel %vm1043_vm4, %v1033_v46, %v4858_v44  ;;  %v1055_v16 = vsel %vm1043_vm4, %v1034_v42, %v4859_v38 }
 0x103   : > { %v4867_v41 = vpop.permute.xlu1 %4866  ;;  %v1053_v7 = vsel %vm1043_vm4, %v1032_v57, %v4854_v21  ;;  %v1052_v39 = vsel %vm1043_vm4, %v1031_v40, %v4853_v62 }
 0x104   : > { %v4862_v10 = vpop.permute.xlu0 %4861  ;;  %v4869_v18 = vunpack.i.h.bf16 %v4867_v41  ;;  %v4868_v59 = vunpack.i.l.bf16 %v4867_v41 }
 0x105   : > { %v4864_v11 = vunpack.i.h.bf16 %v4862_v10  ;;  %v4863_v25 = vunpack.i.l.bf16 %v4862_v10 }
 0x106   : > { %v1075_v32 = vsel %vm1064_vm5, %v1054_v33, %v4868_v59  ;;  %v1076_v56 = vsel %vm1064_vm5, %v1055_v16, %v4869_v18 }
 0x107   : > { %v5951_v31 = vpop.permute.xlu1 %4876  ;;  %v1073_v13 = vsel %vm1064_vm5, %v1052_v39, %v4863_v25  ;;  %v1074_v12 = vsel %vm1064_vm5, %v1053_v7, %v4864_v11 }
 0x108   : > { %v4872_v6 = vpop.permute.xlu0 %4871  ;;  %v4879_v51 = vunpack.i.h.bf16 %v5951_v31  ;;  %v4878_v9 = vunpack.i.l.bf16 %v5951_v31 }
 0x109   : > { %v4874_v35 = vunpack.i.h.bf16 %v4872_v6  ;;  %v4873_v2 = vunpack.i.l.bf16 %v4872_v6 }
 0x10a   : > { %v1096_v62 = vsel %vm1085_vm6, %v1075_v32, %v4878_v9  ;;  %v1097_v18 = vsel %vm1085_vm6, %v1076_v56, %v4879_v51 }
 0x10b   : > { %v5953_v58 = vpop.permute.xlu1 %4886  ;;  %v1094_v61 = vsel %vm1085_vm6, %v1073_v13, %v4873_v2  ;;  %v1095_v63 = vsel %vm1085_vm6, %v1074_v12, %v4874_v35 }
 0x10c   : > { %v4882_v55 = vpop.permute.xlu0 %4881  ;;  %v4889_v4 = vunpack.i.h.bf16 %v5953_v58  ;;  %v4888_v28 = vunpack.i.l.bf16 %v5953_v58 }
 0x10d   : > { %v4884_v8 = vunpack.i.h.bf16 %v4882_v55  ;;  %v4883_v17 = vunpack.i.l.bf16 %v4882_v55 }
 0x10e   : > { %v1117_v42 = vsel %vm1106_vm7, %v1096_v62, %v4888_v28  ;;  %v1118_v46 = vsel %vm1106_vm7, %v1097_v18, %v4889_v4 }
 0x10f   : > { %v4897_v36 = vpop.permute.xlu1 %4896  ;;  %v1115_v41 = vsel %vm1106_vm7, %v1094_v61, %v4883_v17  ;;  %v1116_v10 = vsel %vm1106_vm7, %v1095_v63, %v4884_v8 }
 0x110   : > { %v4892_v37 = vpop.permute.xlu0 %4891  ;;  %v4899_v6 = vunpack.i.h.bf16 %v4897_v36  ;;  %v4898_v55 = vunpack.i.l.bf16 %v4897_v36 }
 0x111   : > { %v4894_v43 = vunpack.i.h.bf16 %v4892_v37  ;;  %v4893_v29 = vunpack.i.l.bf16 %v4892_v37 }
 0x112   : > { %v1138_v57 = vsel %vm1127_vm8, %v1117_v42, %v4898_v55  ;;  %v1139_v40 = vsel %vm1127_vm8, %v1118_v46, %v4899_v6 }
 0x113   : > { %v4907_v34 = vpop.permute.xlu1 %4906  ;;  %v1136_v31 = vsel %vm1127_vm8, %v1115_v41, %v4893_v29  ;;  %v1137_v24 = vsel %vm1127_vm8, %v1116_v10, %v4894_v43 }
 0x114   : > { %v4902_v22 = vpop.permute.xlu0 %4901  ;;  %v4909_v38 = vunpack.i.h.bf16 %v4907_v34  ;;  %v4908_v44 = vunpack.i.l.bf16 %v4907_v34 }
 0x115   : > { %v4904_v60 = vunpack.i.h.bf16 %v4902_v22  ;;  %v4903_v50 = vunpack.i.l.bf16 %v4902_v22 }
 0x116   : > { %v1159_v7 = vsel %vm1148_vm9, %v1138_v57, %v4908_v44  ;;  %v1160_v39 = vsel %vm1148_vm9, %v1139_v40, %v4909_v38 }
 0x117   : > { %v4917_v3 = vpop.permute.xlu1 %4916  ;;  %v1157_v21 = vsel %vm1148_vm9, %v1136_v31, %v4903_v50  ;;  %v1158_v58 = vsel %vm1148_vm9, %v1137_v24, %v4904_v60 }
 0x118   : > { %v4912_v14 = vpop.permute.xlu0 %4911  ;;  %v4919_v9 = vunpack.i.h.bf16 %v4917_v3  ;;  %v4918_v60 = vunpack.i.l.bf16 %v4917_v3 }
 0x119   : > { %v4914_v30 = vunpack.i.h.bf16 %v4912_v14  ;;  %v4913_v5 = vunpack.i.l.bf16 %v4912_v14 }
 0x11a   : > { %v1036_v3 = vsel %vm1022_vm3, %v5609_v49, %v4919_v9 }
 0x11b   : > { %v1178_v59 = vsel %vm1169_vm10, %v1157_v21, %v4913_v5  ;;  %v1179_v36 = vsel %vm1169_vm10, %v1158_v58, %v4914_v30  ;;  %v4927_v37 = vpop.permute.xlu1 %4926  ;;  %v1035_v30 = vsel %vm1022_vm3, %v5607_v48, %v4918_v60 }
 0x11c   : > { %v1194_v11 = vpack.c.bf16 %v1179_v36, %v1178_v59  ;;  %v4922_v25 = vpop.permute.xlu0 %4921  ;;  %v4929_v29 = vunpack.i.h.bf16 %v4927_v37  ;;  %v4928_v51 = vunpack.i.l.bf16 %v4927_v37 }
 0x11d   : > { %v4924_v33 = vunpack.i.h.bf16 %v4922_v25  ;;  %v4923_v16 = vunpack.i.l.bf16 %v4922_v25 }
 0x11e   : > { %4073 = vmatprep.mubr.msk.bf16.mxu0 %vm1227_vm11, %v1194_v11  ;;  %v1038_v55 = vsel %vm1022_vm3, %v5651_v23, %v4929_v29  ;;  %v1037_v14 = vsel %vm1022_vm3, %v5646_v20, %v4928_v51  ;;  %v5087_v11 = vld [vmem:[#allocation2 + $0x60] sm:$0xff]  }
 0x11f   : > { %v1181_v35 = vsel %vm1169_vm10, %v1160_v39, %v4924_v33  ;;  %v1180_v2 = vsel %vm1169_vm10, %v1159_v7, %v4923_v16  ;;  %v4937_v34 = vpop.permute.xlu1 %4936  ;;  %4093 = vmatprep.subr.bf16.mxu0 %v5087_v11 }
 0x120   : > { %v1195_v32 = vpack.c.bf16 %v1181_v35, %v1180_v2  ;;  %v4932_v56 = vpop.permute.xlu0 %4931  ;;  %v4939_v50 = vunpack.i.h.bf16 %v4937_v34  ;;  %v4938_v61 = vunpack.i.l.bf16 %v4937_v34  ;;  %4094 = vmatpush3.bf16.msra.mxu0 %v5087_v11 }
 0x121   : > { %v4934_v63 = vunpack.i.h.bf16 %v4932_v56  ;;  %v4933_v4 = vunpack.i.l.bf16 %v4932_v56 }
 0x122   : > { %4074 = vmatmul.mubr.msk.bf16.gmra.mrb[8].mxu0 %vm1227_vm11, %v1195_v32  ;;  %v1058_v5 = vsel %vm1043_vm4, %v1037_v14, %v4938_v61  ;;  %v1059_v38 = vsel %vm1043_vm4, %v1038_v55, %v4939_v50  ;;  %v5088_v50 = vld [vmem:[#allocation2 + $0x68] sm:$0xff]  }
 0x123   : > { %v4947_v8 = vpop.permute.xlu1 %4946  ;;  %v1057_v44 = vsel %vm1043_vm4, %v1036_v3, %v4934_v63  ;;  %v1056_v21 = vsel %vm1043_vm4, %v1035_v30, %v4933_v4  ;;  %4095 = vmatprep.subr.bf16.mxu0 %v5088_v50 }
 0x124   : > { %v4942_v17 = vpop.permute.xlu0 %4941  ;;  %v4949_v41 = vunpack.i.h.bf16 %v4947_v8  ;;  %v4948_v10 = vunpack.i.l.bf16 %v4947_v8  ;;  %4096 = vmatpush3.bf16.msra.mxu0 %v5088_v50 }
 0x125   : > { %v4944_v31 = vunpack.i.h.bf16 %v4942_v17  ;;  %v4943_v24 = vunpack.i.l.bf16 %v4942_v17 }
 0x126   : > { %v1079_v20 = vsel %vm1064_vm5, %v1058_v5, %v4948_v10  ;;  %v1080_v18 = vsel %vm1064_vm5, %v1059_v38, %v4949_v41 }
 0x127   : > { %v5997_v22 = vpop.permute.xlu1 %4956  ;;  %v1077_v48 = vsel %vm1064_vm5, %v1056_v21, %v4943_v24  ;;  %v1078_v37 = vsel %vm1064_vm5, %v1057_v44, %v4944_v31  ;;  %v5089_v44 = vld [vmem:[#allocation2 + $0x70] sm:$0xff]  }
 0x128   : > { %v4952_v13 = vpop.permute.xlu0 %4951  ;;  %v4959_v25 = vunpack.i.h.bf16 %v5997_v22  ;;  %v4958_v57 = vunpack.i.l.bf16 %v5997_v22  ;;  %4097 = vmatprep.subr.bf16.mxu0 %v5089_v44 }
 0x129   : > { %v4954_v23 = vunpack.i.h.bf16 %v4952_v13  ;;  %v4953_v58 = vunpack.i.l.bf16 %v4952_v13  ;;  %4098 = vmatpush3.bf16.msra.mxu0 %v5089_v44 }
 0x12a   : > { %v1100_v61 = vsel %vm1085_vm6, %v1079_v20, %v4958_v57  ;;  %v1101_v63 = vsel %vm1085_vm6, %v1080_v18, %v4959_v25  ;;  %v5090_v18 = vld [vmem:[#allocation2 + $0x78] sm:$0xff]  }
 0x12b   : > { %v5999_v12 = vpop.permute.xlu1 %4966  ;;  %v1098_v16 = vsel %vm1085_vm6, %v1077_v48, %v4953_v58  ;;  %v1099_v7 = vsel %vm1085_vm6, %v1078_v37, %v4954_v23  ;;  %4099 = vmatprep.subr.bf16.mxu0 %v5090_v18 }
 0x12c   : > { %v4962_v43 = vpop.permute.xlu0 %4961  ;;  %v4969_v39 = vunpack.i.h.bf16 %v5999_v12  ;;  %v4968_v35 = vunpack.i.l.bf16 %v5999_v12 }
 0x12d   : > { %v4964_v59 = vunpack.i.h.bf16 %v4962_v43  ;;  %v4963_v49 = vunpack.i.l.bf16 %v4962_v43  ;;  %4100 = vmatpush3.bf16.msra.mxu0 %v5090_v18  ;;  %v5095_v18 = vld [vmem:[#allocation2 + $0x120] sm:$0xff]  }
 0x12e   : > { %v1121_v10 = vsel %vm1106_vm7, %v1100_v61, %v4968_v35 }
 0x12f   : > { %v6001_v28 = vpop.permute.xlu1 %4976  ;;  %v1119_v34 = vsel %vm1106_vm7, %v1098_v16, %v4963_v49  ;;  %v1120_v32 = vsel %vm1106_vm7, %v1099_v7, %v4964_v59 }
 0x130   : > { %v4972_v6 = vpop.permute.xlu0 %4971  ;;  %v4979_v56 = vunpack.i.h.bf16 %v6001_v28  ;;  %v4978_v8 = vunpack.i.l.bf16 %v6001_v28 }
 0x131   : > { %v4974_v42 = vunpack.i.h.bf16 %v4972_v6  ;;  %v4973_v46 = vunpack.i.l.bf16 %v4972_v6  ;;  %v1122_v6 = vsel %vm1106_vm7, %v1101_v63, %v4969_v39 }
 0x132   : > { %v1142_v31 = vsel %vm1127_vm8, %v1121_v10, %v4978_v8  ;;  %v1143_v24 = vsel %vm1127_vm8, %v1122_v6, %v4979_v56  ;;  %v5094_v8 = vld [vmem:[#allocation2 + $0x118] sm:$0xff]  }
 0x133   : > { %v4987_v62 = vpop.permute.xlu1 %4986  ;;  %v1140_v22 = vsel %vm1127_vm8, %v1119_v34, %v4973_v46  ;;  %v1141_v13 = vsel %vm1127_vm8, %v1120_v32, %v4974_v42  ;;  %v5092_v42 = vld [vmem:[#allocation2 + $0x108] sm:$0xff]   ;;  %v5093_v46 = vld [vmem:[#allocation2 + $0x110] sm:$0xff]  }
 0x134   : > { %v4982_v36 = vpop.permute.xlu0 %4981  ;;  %v4989_v12 = vunpack.i.h.bf16 %v4987_v62  ;;  %v4988_v51 = vunpack.i.l.bf16 %v4987_v62 }
 0x135   : > { %v4984_v40 = vunpack.i.h.bf16 %v4982_v36  ;;  %v4983_v33 = vunpack.i.l.bf16 %v4982_v36  ;;  %v5091_v36 = vld [vmem:[#allocation2 + $0x100] sm:$0xff]  }
 0x136   : > { %v1163_v5 = vsel %vm1148_vm9, %v1142_v31, %v4988_v51  ;;  %v1164_v38 = vsel %vm1148_vm9, %v1143_v24, %v4989_v12  ;;  %4213 = vmatprep.subr.bf16.mxu1 %v5091_v36 }
 0x137   : > { %v6025_v2 = vpop.permute.xlu1 %4996  ;;  %v1161_v9 = vsel %vm1148_vm9, %v1140_v22, %v4983_v33  ;;  %v1162_v60 = vsel %vm1148_vm9, %v1141_v13, %v4984_v40  ;;  %4214 = vmatpush3.bf16.msra.mxu1 %v5091_v36 }
 0x138   : > { %v4992_v17 = vpop.permute.xlu0 %4991  ;;  %4215 = vmatprep.subr.bf16.mxu1 %v5092_v42  ;;  %v4999_v57 = vunpack.i.h.bf16 %v6025_v2  ;;  %v4998_v40 = vunpack.i.l.bf16 %v6025_v2 }
 0x139   : > { %v4994_v43 = vunpack.i.h.bf16 %v4992_v17  ;;  %v4993_v29 = vunpack.i.l.bf16 %v4992_v17 }
 0x13a   : > { %v1040_v2 = vsel %vm1022_vm3, %v5683_v54, %v4999_v57 }
 0x13b   : > { %v1182_v4 = vsel %vm1169_vm10, %v1161_v9, %v4993_v29  ;;  %v1183_v28 = vsel %vm1169_vm10, %v1162_v60, %v4994_v43  ;;  %v5007_v41 = vpop.permute.xlu1 %5006  ;;  %4216 = vmatpush3.bf16.msra.mxu1 %v5092_v42  ;;  %v1039_v29 = vsel %vm1022_vm3, %v5681_v53, %v4998_v40 }
 0x13c   : > { %v1196_v55 = vpack.c.bf16 %v1183_v28, %v1182_v4  ;;  %v5002_v14 = vpop.permute.xlu0 %5001  ;;  %v5009_v11 = vunpack.i.h.bf16 %v5007_v41  ;;  %v5008_v25 = vunpack.i.l.bf16 %v5007_v41  ;;  %4217 = vmatprep.subr.bf16.mxu1 %v5093_v46 }
 0x13d   : > { %v5004_v3 = vunpack.i.h.bf16 %v5002_v14  ;;  %v5003_v30 = vunpack.i.l.bf16 %v5002_v14 }
 0x13e   : > { %4077 = vmatprep.mubr.msk.bf16.mxu0 %vm1227_vm11, %v1196_v55  ;;  %v1042_v17 = vsel %vm1022_vm3, %v5711_v19, %v5009_v11  ;;  %v1041_v22 = vsel %vm1022_vm3, %v5706_v15, %v5008_v25 }
 0x13f   : > { %v1185_v21 = vsel %vm1169_vm10, %v1164_v38, %v5004_v3  ;;  %v1184_v23 = vsel %vm1169_vm10, %v1163_v5, %v5003_v30  ;;  %v5017_v58 = vpop.permute.xlu1 %5016  ;;  %4218 = vmatpush3.bf16.msra.mxu1 %v5093_v46 }
 0x140   : > { %v1197_v62 = vpack.c.bf16 %v1185_v21, %v1184_v23  ;;  %v5012_v20 = vpop.permute.xlu0 %5011  ;;  %v5019_v33 = vunpack.i.h.bf16 %v5017_v58  ;;  %v5018_v16 = vunpack.i.l.bf16 %v5017_v58  ;;  %4219 = vmatprep.subr.bf16.mxu1 %v5094_v8 }
 0x141   : > { %v5014_v39 = vunpack.i.h.bf16 %v5012_v20  ;;  %v5013_v35 = vunpack.i.l.bf16 %v5012_v20 }
 0x142   : > { %4078 = vmatmul.mubr.msk.bf16.gmra.mrb[12].mxu0 %vm1227_vm11, %v1197_v62  ;;  %v1062_v12 = vsel %vm1043_vm4, %v1041_v22, %v5018_v16  ;;  %v1063_v51 = vsel %vm1043_vm4, %v1042_v17, %v5019_v33 }
 0x143   : > { %v5027_v59 = vpop.permute.xlu1 %5026  ;;  %v1061_v60 = vsel %vm1043_vm4, %v1040_v2, %v5014_v39  ;;  %v1060_v19 = vsel %vm1043_vm4, %v1039_v29, %v5013_v35  ;;  %4220 = vmatpush3.bf16.msra.mxu1 %v5094_v8 }
 0x144   : > { %v5022_v49 = vpop.permute.xlu0 %5021  ;;  %v5029_v32 = vunpack.i.h.bf16 %v5027_v59  ;;  %v5028_v56 = vunpack.i.l.bf16 %v5027_v59  ;;  %4221 = vmatprep.subr.bf16.mxu1 %v5095_v18 }
 0x145   : > { %v5024_v13 = vunpack.i.h.bf16 %v5022_v49  ;;  %v5023_v43 = vunpack.i.l.bf16 %v5022_v49 }
 0x146   : > { %v1083_v63 = vsel %vm1064_vm5, %v1062_v12, %v5028_v56  ;;  %v1084_v54 = vsel %vm1064_vm5, %v1063_v51, %v5029_v32  ;;  %v5096_v56 = vld [vmem:[#allocation2 + $0x128] sm:$0xff]   ;;  %v5097_v51 = vld [vmem:[#allocation2 + $0x130] sm:$0xff]  }
 0x147   : > { %v5037_v48 = vpop.permute.xlu1 %5036  ;;  %v1081_v53 = vsel %vm1064_vm5, %v1060_v19, %v5023_v43  ;;  %v1082_v41 = vsel %vm1064_vm5, %v1061_v60, %v5024_v13  ;;  %4222 = vmatpush3.bf16.msra.mxu1 %v5095_v18  ;;  %v6089_v60 = vld [vmem:[#allocation2] sm:$0xff]  }
 0x148   : > { %v5032_v37 = vpop.permute.xlu0 %5031  ;;  %v5039_v50 = vunpack.i.h.bf16 %v5037_v48  ;;  %v5038_v61 = vunpack.i.l.bf16 %v5037_v48  ;;  %4223 = vmatprep.subr.bf16.mxu1 %v5096_v56  ;;  %4117 = vmatprep.subr.bf16.mxu0 %v6089_v60  ;;  %v6093_v19 = vld [vmem:[#allocation2 + $0x140] sm:$0xff]  }
 0x149   : > { %v5034_v4 = vunpack.i.h.bf16 %v5032_v37  ;;  %v5033_v28 = vunpack.i.l.bf16 %v5032_v37 }
 0x14a   : > { %v1104_v30 = vsel %vm1085_vm6, %v1083_v63, %v5038_v61  ;;  %v1105_v5 = vsel %vm1085_vm6, %v1084_v54, %v5039_v50  ;;  %v6096_v50 = vstv %s3676_s19  ;;  %s6560_s19 = scalar_lea.vmem [#allocation5], %s3657_s12  ;;  %s5295_s12 = smov [#allocation5]  }
 0x14b   : > { %v5047_v7 = vpop.permute.xlu1 %5046  ;;  %v1102_v23 = vsel %vm1085_vm6, %v1081_v53, %v5033_v28  ;;  %v1103_v58 = vsel %vm1085_vm6, %v1082_v41, %v5034_v4  ;;  %4224 = vmatpush3.bf16.msra.mxu1 %v5096_v56  ;;  %v1397_v61 = vadd.s32 1, %v6096_v50  ;;  %vm1406_vm14 = vcmp.ge.s32.totalorder %v6096_v50, 0  ;;  %s3560_s27 = sshll.u32 %s6560_s19, 4  ;;  %s5187_s14 = sshll.u32 %s5295_s12, 4  ;;  %s6602_s27 = int_to_ptr.vmem [resolvable:$true] %s3560_s27  ;;  %s5188_s14 = int_to_ptr.vmem [resolvable:$false] %s5187_s14 }
 0x14c   : > { %v5042_v34 = vpop.permute.xlu0 %5041  ;;  %v5049_v10 = vunpack.i.h.bf16 %v5047_v7  ;;  %v5048_v6 = vunpack.i.l.bf16 %v5047_v7  ;;  %4225 = vmatprep.subr.bf16.mxu1 %v5097_v51  ;;  %vm1416_vm15 = vcmp.lt.s32.totalorder %v6096_v50, 16  ;;  %vm1476_vm6 = vcmask 1040384   ;;  %s5183_s9 = scalar_lea.vmem %s6602_s27, 2048  ;;  %s5189_s11 = scalar_lea.vmem %s5188_s14, 4096 }
 0x14d   : > { %v5044_v55 = vunpack.i.h.bf16 %v5042_v34  ;;  %v5043_v14 = vunpack.i.l.bf16 %v5042_v34  ;;  %vm1407_vm12 = vcmp.ge.s32.totalorder %v1397_v61, 0  ;;  %vm1417_vm13 = vcmp.lt.s32.totalorder %v1397_v61, 16  ;;  %vm1426_vm5 = vmand %vm1406_vm14, %vm1416_vm15  ;;  %v5100_v61 = vld [vmem:[#allocation2 + $0x8] sm:$0xff]   ;;  %p5184_p8 = scmp.ne.s32.totalorder %s6602_s27, %s5183_s9  ;;  %p5190_p2 = scmp.lt.s32.totalorder %s6602_s27, %s5188_s14 }
 0x14e   : > { %v1125_v59 = vsel %vm1106_vm7, %v1104_v30, %v5048_v6  ;;  %v1126_v49 = vsel %vm1106_vm7, %v1105_v5, %v5049_v10  ;;  %vm6107_vm4 = vmand %vm1407_vm12, %vm1417_vm13  ;;  %v1399_v28 = vadd.s32 3, %v6096_v50  ;;  %p5191_p5 = scmp.lt.s32.totalorder %s5189_s11, %s5183_s9 }
 0x14f   : > { %v5057_v9 = vpop.permute.xlu1 %5056  ;;  %v1123_v37 = vsel %vm1106_vm7, %v1102_v23, %v5043_v14  ;;  %v1124_v42 = vsel %vm1106_vm7, %v1103_v58, %v5044_v55  ;;  %4226 = vmatpush3.bf16.msra.mxu1 %v5097_v51  ;;  %p5185_p12 = pnand %p5184_p8, %p6733_p10 }
 0x150   : > { %v5052_v15 = vpop.permute.xlu0 %5051  ;;  %v5059_v31 = vunpack.i.h.bf16 %v5057_v9  ;;  %v5058_v24 = vunpack.i.l.bf16 %v5057_v9  ;;  %v5098_v9 = vld [vmem:[#allocation2 + $0x138] sm:$0xff]   ;;  %vm1409_vm7 = vcmp.ge.s32.totalorder %v1399_v28, 0  ;;  %p5192_p6 = por %p5191_p5, %p5190_p2 }
 0x151   : > { %v5054_v38 = vunpack.i.h.bf16 %v5052_v15  ;;  %v5053_v44 = vunpack.i.l.bf16 %v5052_v15  ;;  %4227 = vmatprep.subr.bf16.mxu1 %v5098_v9  ;;  %v6102_v15 = vld [vmem:[%s6669_s2] ss:$0 sm:$0xff]  ;;  %p5186_p0 = pneg %p5185_p12 }
 0x152   : > { %v1146_v46 = vsel %vm1127_vm8, %v1125_v59, %v5058_v24  ;;  %v1147_v11 = vsel %vm1127_vm8, %v1126_v49, %v5059_v31 }
 0x153   : > { %v5067_v3 = vpop.permute.xlu1 %5066  ;;  %v1144_v57 = vsel %vm1127_vm8, %v1123_v37, %v5053_v44  ;;  %v1145_v40 = vsel %vm1127_vm8, %v1124_v42, %v5054_v38  ;;  %4228 = vmatpush3.bf16.msra.mxu1 %v5098_v9  ;;  %vm1419_vm8 = vcmp.lt.s32.totalorder %v1399_v28, 16  ;;  %p5193_p7 = pnand %p5192_p6, %p5186_p0 }
 0x154   : > { %v5062_v21 = vpop.permute.xlu0 %5061  ;;  %v5069_v62 = vunpack.i.h.bf16 %v5067_v3  ;;  %v5068_v20 = vunpack.i.l.bf16 %v5067_v3  ;;  %4245 = vmatprep.subr.bf16.mxu1 %v6093_v19 }
 0x155   : > { %v5064_v36 = vunpack.i.h.bf16 %v5062_v21  ;;  %v5063_v48 = vunpack.i.l.bf16 %v5062_v21 }
 0x156   : > { %v1167_v39 = vsel %vm1148_vm9, %v1146_v46, %v5068_v20  ;;  %v1168_v35 = vsel %vm1148_vm9, %v1147_v11, %v5069_v62 }
 0x157   : > { %v5077_v25 = vpop.permute.xlu1 %5076  ;;  %v1165_v8 = vsel %vm1148_vm9, %v1144_v57, %v5063_v48  ;;  %v1166_v17 = vsel %vm1148_vm9, %v1145_v40, %v5064_v36 }
 0x158   : > { %v5079_v33 = vunpack.i.h.bf16 %v5077_v25  ;;  %v5078_v16 = vunpack.i.l.bf16 %v5077_v25  ;;  %v5072_v7 = vpop.permute.xlu0 %5071 }
 0x159   : > { %v5074_v34 = vunpack.i.h.bf16 %v5072_v7  ;;  %v5073_v32 = vunpack.i.l.bf16 %v5072_v7 }
 0x15a   : > { %v1188_v22 = vsel %vm1169_vm10, %v1167_v39, %v5078_v16  ;;  %v1189_v13 = vsel %vm1169_vm10, %v1168_v35, %v5079_v33 }
 0x15b   : > { %v1199_v43 = vpack.c.bf16 %v1189_v13, %v1188_v22  ;;  %v1186_v2 = vsel %vm1169_vm10, %v1165_v8, %v5073_v32  ;;  %v1187_v29 = vsel %vm1169_vm10, %v1166_v17, %v5074_v34 }
 0x15c   : > { %v1198_v12 = vpack.c.bf16 %v1187_v29, %v1186_v2 }
 0x15e   : > { %4081 = vmatprep.mubr.msk.bf16.mxu0 %vm1227_vm11, %v1198_v12 }
 0x15f   : > { %4082 = vmatmul.mubr.msk.bf16.gmra.mrb[16].mxu0 %vm1227_vm11, %v1199_v43  ;;  %vm6156_vm11 = vmand %vm1409_vm7, %vm1419_vm8 }
 0x1b5   : > { %v4067_v63 = vpop.f32.mrb[0].mxu0 }
 0x1b6   : > { %v1305_v54 = vadd.f32 %v4067_v63, %v6102_v15  ;;  %v1296_v4 = vpop.f32.mrb[1].mxu0 }
 0x1b7   : > { %v1297_v53 = vadd.f32 %v6102_v15, %v1296_v4  ;;  %v4068_v41 = vpop.f32.mrb[2].mxu0  ;;  %v5102_v4 = vld [vmem:[#allocation2 + $0x18] sm:$0xff]  }
 0x1b8   : > { %v1377_v10 = vmax.f32 %v1305_v54, 0.0  ;;  %v1308_v6 = vadd.f32 %v4068_v41, %v6102_v15  ;;  %v1299_v55 = vpop.f32.mrb[3].mxu0  ;;  %v5101_v54 = vld [vmem:[#allocation2 + $0x10] sm:$0xff]   ;;  %v5103_v41 = vld [vmem:[#allocation2 + $0x20] sm:$0xff]  }
 0x1b9   : > { %v1375_v14 = vmax.f32 %v1297_v53, 0.0  ;;  %v1300_v31 = vadd.f32 %v6102_v15, %v1299_v55  ;;  %v1398_v53 = vadd.s32 2, %v6096_v50  ;;  %v5104_v55 = vld [vmem:[#allocation2 + $0x28] sm:$0xff]  }
 0x1ba   : > { %v1438_v24 = vsel %vm6107_vm4, %v1377_v10, 0.0  ;;  %v1378_v3 = vmax.f32 %v1308_v6, 0.0 }
 0x1bb   : > { %v1480_v30 = vrot.slane %v1438_v24, 7  ;;  %v1436_v5 = vsel %vm1426_vm5, %v1375_v14, 0.0  ;;  %v1376_v38 = vmax.f32 %v1300_v31, 0.0  ;;  %vm1408_vm9 = vcmp.ge.s32.totalorder %v1398_v53, 0 }
 0x1bc   : > { %v6116_v44 = vrot.slane %v1436_v5, 7  ;;  %v1439_v21 = vsel %vm6107_vm4, %v1378_v3, 0.0  ;;  %vm1418_vm10 = vcmp.lt.s32.totalorder %v1398_v53, 16 }
 0x1bd   : > { %v1538_v23 = vsel %vm1476_vm6, 0.0, %v1480_v30  ;;  %v1481_v58 = vrot.slane %v1439_v21, 7  ;;  %v1437_v62 = vsel %vm1426_vm5, %v1376_v38, 0.0  ;;  %vm6161_vm12 = vmand %vm1408_vm9, %vm1418_vm10 }
 0x1be   : > { %v1973_v20 = vrot.slane %v1538_v23, 2  ;;  %v1537_v18 = vsel %vm1476_vm6, 0.0, %v6116_v44  ;;  %v1478_v59 = vrot.slane %v1437_v62, 7  ;;  %v1602_v37 = vrot.slane %v1538_v23, 1 }
 0x1bf   : > { %v1597_v49 = vrot.slane %v1537_v18, 1  ;;  %v1482_v36 = vsel %vm1476_vm6, %v1480_v30, %v1481_v58  ;;  %v1548_v48 = vsel %vm1476_vm6, %v1481_v58, 0.0  ;;  %v1968_v32 = vrot.slane %v1537_v18, 2 }
 0x1c0   : > { %v1605_v42 = vrot.slane %v1548_v48, 1  ;;  %v6125_v46 = vpack.c.bf16 %v1482_v36, %v1480_v30  ;;  %v1976_v11 = vrot.slane %v1548_v48, 2  ;;  %v6129_v25 = vsel %vm1476_vm6, %v6116_v44, %v1478_v59 }
 0x1c1   : > { %v1547_v57 = vsel %vm1476_vm6, %v1478_v59, 0.0  ;;  %v1603_v40 = vrot.slane %v1482_v36, 1  ;;  %v1598_v33 = vrot.slane %v6129_v25, 1  ;;  %v3695_v16 = vpack.c.bf16 %v6129_v25, %v6116_v44  ;;  %v5113_v44 = vld [vmem:[#allocation2 + $0x90] sm:$0xff]  }
 0x1c2   : > { %v1600_v7 = vrot.slane %v1547_v57, 1  ;;  %v1971_v39 = vrot.slane %v1547_v57, 2  ;;  %v1974_v35 = vrot.slane %v1482_v36, 2  ;;  %v1969_v34 = vrot.slane %v6129_v25, 2 }
 0x1c3   : > { %v1604_v56 = vsel %vm414_vm1, %v1602_v37, %v1603_v40  ;;  %v1606_v8 = vsel %vm414_vm1, %v1603_v40, %v1605_v42  ;;  %v1599_v17 = vsel %vm414_vm1, %v1597_v49, %v1598_v33 }
 0x1c4   : > { %v1654_v22 = vpack.c.bf16 %v1606_v8, %v1604_v56  ;;  %v1601_v13 = vsel %vm414_vm1, %v1598_v33, %v1600_v7  ;;  %v1975_v43 = vsel %vm525_vm0, %v1973_v20, %v1974_v35  ;;  %v1977_v2 = vsel %vm525_vm0, %v1974_v35, %v1976_v11  ;;  %v5105_v20 = vld [vmem:[#allocation2 + $0x30] sm:$0xff]  }
 0x1c5   : > { %v1653_v29 = vpack.c.bf16 %v1601_v13, %v1599_v17  ;;  %v6142_v12 = vpack.c.bf16 %v1977_v2, %v1975_v43  ;;  %v6145_v51 = vsel %vm525_vm0, %v1968_v32, %v1969_v34  ;;  %v6148_v9 = vsel %vm525_vm0, %v1969_v34, %v1971_v39  ;;  %v5107_v39 = vld [vmem:[#allocation2 + $0x38] sm:$0xff]  }
 0x1c6   : > { %4229 = vmatprep.mubr.bf16.mxu1 %v1654_v22  ;;  %v2024_v63 = vpack.c.bf16 %v6148_v9, %v6145_v51  ;;  %v5128_v51 = vld [vmem:[#allocation2 + $0x198] sm:$0xff]   ;;  %v5129_v9 = vld [vmem:[#allocation2 + $0xd0] sm:$0xff]  }
 0x1c7   : > { %4101 = vmatprep.mubr.bf16.mxu0 %v1653_v29 }
 0x1c8   : > { %4102 = vmatmul.mubr.bf16.vlgmr.msra.gmra.mrb[20].mxu0 %v1654_v22 }
 0x1c9   : > { %4118 = vmatpush3.bf16.msra.mxu0 %v6089_v60 }
 0x1ca   : > { %4119 = vmatprep.subr.bf16.mxu0 %v5100_v61 }
 0x1cd   : > { %4120 = vmatpush3.bf16.msra.mxu0 %v5100_v61 }
 0x1ce   : > { %4121 = vmatprep.subr.bf16.mxu0 %v5101_v54 }
 0x1d1   : > { %4122 = vmatpush3.bf16.msra.mxu0 %v5101_v54 }
 0x1d2   : > { %4123 = vmatprep.subr.bf16.mxu0 %v5102_v4 }
 0x1d5   : > { %v4071_v10 = vpop.f32.mrb[4].mxu0  ;;  %4124 = vmatpush3.bf16.msra.mxu0 %v5102_v4 }
 0x1d6   : > { %v1321_v60 = vadd.f32 %v4071_v10, %v6102_v15  ;;  %v1312_v6 = vpop.f32.mrb[5].mxu0  ;;  %4125 = vmatprep.subr.bf16.mxu0 %v5103_v41 }
 0x1d7   : > { %v1313_v31 = vadd.f32 %v6102_v15, %v1312_v6  ;;  %v4072_v24 = vpop.f32.mrb[6].mxu0 }
 0x1d8   : > { %v1381_v3 = vmax.f32 %v1321_v60, 0.0  ;;  %v1324_v5 = vadd.f32 %v4072_v24, %v6102_v15  ;;  %v1315_v38 = vpop.f32.mrb[7].mxu0 }
 0x1d9   : > { %v1379_v21 = vmax.f32 %v1313_v31, 0.0  ;;  %v1316_v23 = vadd.f32 %v6102_v15, %v1315_v38  ;;  %4126 = vmatpush3.bf16.msra.mxu0 %v5103_v41 }
 0x1da   : > { %v1442_v58 = vsel %vm6156_vm11, %v1381_v3, 0.0  ;;  %v1382_v62 = vmax.f32 %v1324_v5, 0.0  ;;  %4127 = vmatprep.subr.bf16.mxu0 %v5104_v55  ;;  %v6195_v3 = vld [vmem:[#allocation2 + $0x80] sm:$0xff]   ;;  %v5108_v5 = vld [vmem:[#allocation2 + $0x148] sm:$0xff]  }
 0x1db   : > { %v1486_v18 = vrot.slane %v1442_v58, 7  ;;  %v1440_v59 = vsel %vm6161_vm12, %v1379_v21, 0.0  ;;  %v1380_v49 = vmax.f32 %v1316_v23, 0.0  ;;  %v5110_v58 = vld [vmem:[#allocation2 + $0x150] sm:$0xff]  }
 0x1dc   : > { %v1483_v36 = vrot.slane %v1440_v59, 7  ;;  %v1443_v48 = vsel %vm6156_vm11, %v1382_v62, 0.0  ;;  %v5112_v62 = vld [vmem:[#allocation2 + $0x158] sm:$0xff]   ;;  %v5114_v59 = vld [vmem:[#allocation2 + $0x160] sm:$0xff]  }
 0x1dd   : > { %v1540_v37 = vsel %vm1476_vm6, 0.0, %v1486_v18  ;;  %v1487_v42 = vrot.slane %v1443_v48, 7  ;;  %v1441_v11 = vsel %vm6161_vm12, %v1380_v49, 0.0  ;;  %4128 = vmatpush3.bf16.msra.mxu0 %v5104_v55 }
 0x1de   : > { %v1612_v57 = vrot.slane %v1540_v37, 1  ;;  %v1983_v40 = vrot.slane %v1540_v37, 2  ;;  %v1539_v33 = vsel %vm1476_vm6, 0.0, %v1483_v36  ;;  %v1484_v7 = vrot.slane %v1441_v11, 7  ;;  %4129 = vmatprep.subr.bf16.mxu0 %v5105_v20 }
 0x1df   : > { %v1607_v35 = vrot.slane %v1539_v33, 1  ;;  %v1978_v34 = vrot.slane %v1539_v33, 2  ;;  %v1488_v32 = vsel %vm1476_vm6, %v1486_v18, %v1487_v42  ;;  %v1550_v56 = vsel %vm1476_vm6, %v1487_v42, 0.0 }
 0x1e0   : > { %v1615_v8 = vrot.slane %v1550_v56, 1  ;;  %v1986_v17 = vrot.slane %v1550_v56, 2  ;;  %v1485_v22 = vsel %vm1476_vm6, %v1483_v36, %v1484_v7  ;;  %v1549_v13 = vsel %vm1476_vm6, %v1484_v7, 0.0 }
 0x1e1   : > { %v1610_v43 = vrot.slane %v1549_v13, 1  ;;  %v1979_v2 = vrot.slane %v1485_v22, 2  ;;  %v1981_v29 = vrot.slane %v1549_v13, 2  ;;  %v1608_v61 = vrot.slane %v1485_v22, 1  ;;  %4130 = vmatpush3.bf16.msra.mxu0 %v5105_v20 }
 0x1e2   : > { %v1613_v54 = vrot.slane %v1488_v32, 1  ;;  %4131 = vmatprep.subr.bf16.mxu0 %v5107_v39  ;;  %v6181_v4 = vpack.c.bf16 %v1485_v22, %v1483_v36  ;;  %v6183_v28 = vpack.c.bf16 %v1488_v32, %v1486_v18  ;;  %v1984_v53 = vrot.slane %v1488_v32, 2 }
 0x1e3   : > { %v1980_v41 = vsel %vm525_vm0, %v1978_v34, %v1979_v2  ;;  %v1982_v10 = vsel %vm525_vm0, %v1979_v2, %v1981_v29  ;;  %v1609_v60 = vsel %vm414_vm1, %v1607_v35, %v1608_v61  ;;  %v1611_v6 = vsel %vm414_vm1, %v1608_v61, %v1610_v43  ;;  %v5118_v34 = vld [vmem:[#allocation2 + $0x170] sm:$0xff]  }
 0x1e4   : > { %v6189_v55 = vpack.c.bf16 %v1982_v10, %v1980_v41  ;;  %v6191_v14 = vpack.c.bf16 %v1611_v6, %v1609_v60  ;;  %v1614_v31 = vsel %vm414_vm1, %v1612_v57, %v1613_v54  ;;  %v1616_v24 = vsel %vm414_vm1, %v1613_v54, %v1615_v8  ;;  %v5120_v54 = vld [vmem:[#allocation2 + $0x178] sm:$0xff]  }
 0x1e5   : > { %v6197_v30 = vpack.c.bf16 %v1616_v24, %v1614_v31  ;;  %4132 = vmatpush3.bf16.msra.mxu0 %v5107_v39  ;;  %v1985_v38 = vsel %vm525_vm0, %v1983_v40, %v1984_v53  ;;  %v1987_v21 = vsel %vm525_vm0, %v1984_v53, %v1986_v17  ;;  %v1401_v20 = vadd.s32 5, %v6096_v50 }
 0x1e6   : > { %4105 = vmatprep.mubr.bf16.mxu0 %v6191_v14  ;;  %4230 = vmatmul.mubr.bf16.vlgmr.msra.gmra.mrb[0].mxu1 %v6191_v14  ;;  %v6203_v23 = vpack.c.bf16 %v1987_v21, %v1985_v38  ;;  %v1400_v18 = vadd.s32 4, %v6096_v50 }
 0x1e7   : > { %4106 = vmatmul.mubr.bf16.gmra.mrb[24].mxu0 %v6197_v30  ;;  %4233 = vmatprep.mubr.bf16.mxu1 %v6197_v30  ;;  %vm1411_vm13 = vcmp.ge.s32.totalorder %v1401_v20, 0  ;;  %vm1421_vm14 = vcmp.lt.s32.totalorder %v1401_v20, 16 }
 0x1e8   : > { %4246 = vmatpush3.bf16.msra.mxu1 %v6093_v19  ;;  %4149 = vmatprep.subr.bf16.mxu0 %v6195_v3  ;;  %vm1410_vm15 = vcmp.ge.s32.totalorder %v1400_v18, 0  ;;  %vm1420_vm4 = vcmp.lt.s32.totalorder %v1400_v18, 16  ;;  %v5116_v19 = vld [vmem:[#allocation2 + $0x168] sm:$0xff]   ;;  %vm6212_vm5 = vmand %vm1411_vm13, %vm1421_vm14 }
 0x1e9   : > { %4247 = vmatprep.subr.bf16.mxu1 %v5108_v5  ;;  %vm6217_vm7 = vmand %vm1410_vm15, %vm1420_vm4  ;;  %vm5294_vm15 = vmmov 1  }
 0x1ea   : > { %vm3693_vm14 = vmneg %vm1476_vm6 }
 0x1eb   : > { %vm6291_vm4 = vmpackc.low %vm5294_vm15, %vm3693_vm14 }
 0x1ec   : > { %4248 = vmatpush3.bf16.msra.mxu1 %v5108_v5 }
 0x1ed   : > { %4249 = vmatprep.subr.bf16.mxu1 %v5110_v58 }
 0x1f0   : > { %4250 = vmatpush3.bf16.msra.mxu1 %v5110_v58 }
 0x1f1   : > { %4251 = vmatprep.subr.bf16.mxu1 %v5112_v62 }
 0x1f4   : > { %4252 = vmatpush3.bf16.msra.mxu1 %v5112_v62 }
 0x1f5   : > { %v4075_v49 = vpop.f32.mrb[8].mxu0  ;;  %4253 = vmatprep.subr.bf16.mxu1 %v5114_v59 }
 0x1f6   : > { %v1337_v36 = vadd.f32 %v4075_v49, %v6102_v15  ;;  %v1328_v48 = vpop.f32.mrb[9].mxu0 }
 0x1f7   : > { %v1329_v42 = vadd.f32 %v6102_v15, %v1328_v48  ;;  %v4076_v11 = vpop.f32.mrb[10].mxu0 }
 0x1f8   : > { %v1385_v57 = vmax.f32 %v1337_v36, 0.0  ;;  %v1340_v33 = vadd.f32 %v4076_v11, %v6102_v15  ;;  %v1331_v7 = vpop.f32.mrb[11].mxu0  ;;  %4254 = vmatpush3.bf16.msra.mxu1 %v5114_v59 }
 0x1f9   : > { %v1383_v39 = vmax.f32 %v1329_v42, 0.0  ;;  %v1332_v35 = vadd.f32 %v6102_v15, %v1331_v7  ;;  %4255 = vmatprep.subr.bf16.mxu1 %v5116_v19 }
 0x1fa   : > { %v1446_v32 = vsel %vm6212_vm5, %v1385_v57, 0.0  ;;  %v1386_v56 = vmax.f32 %v1340_v33, 0.0 }
 0x1fb   : > { %v1492_v8 = vrot.slane %v1446_v32, 7  ;;  %v1444_v17 = vsel %vm6217_vm7, %v1383_v39, 0.0  ;;  %v1384_v22 = vmax.f32 %v1332_v35, 0.0 }
 0x1fc   : > { %v1489_v13 = vrot.slane %v1444_v17, 7  ;;  %v1447_v43 = vsel %vm6212_vm5, %v1386_v56, 0.0  ;;  %4256 = vmatpush3.bf16.msra.mxu1 %v5116_v19  ;;  %v6237_v19 = vld [vmem:[#allocation2 + $0x180] sm:$0xff]  }
 0x1fd   : > { %v1542_v2 = vsel %vm1476_vm6, 0.0, %v1492_v8  ;;  %v1493_v29 = vrot.slane %v1447_v43, 7  ;;  %v1445_v61 = vsel %vm6217_vm7, %v1384_v22, 0.0  ;;  %4257 = vmatprep.subr.bf16.mxu1 %v5118_v34  ;;  %v1403_v22 = vadd.s32 7, %v6096_v50 }
 0x1fe   : > { %v1622_v53 = vrot.slane %v1542_v2, 1  ;;  %v1993_v41 = vrot.slane %v1542_v2, 2  ;;  %v1541_v10 = vsel %vm1476_vm6, 0.0, %v1489_v13  ;;  %v1490_v60 = vrot.slane %v1445_v61, 7 }
 0x1ff   : > { %v1617_v6 = vrot.slane %v1541_v10, 1  ;;  %v1988_v31 = vrot.slane %v1541_v10, 2  ;;  %v1494_v24 = vsel %vm1476_vm6, %v1492_v8, %v1493_v29  ;;  %v1552_v5 = vsel %vm1476_vm6, %v1493_v29, 0.0 }
 0x200   : > { %v1625_v38 = vrot.slane %v1552_v5, 1  ;;  %v1996_v21 = vrot.slane %v1552_v5, 2  ;;  %v1491_v58 = vsel %vm1476_vm6, %v1489_v13, %v1490_v60  ;;  %v1551_v62 = vsel %vm1476_vm6, %v1490_v60, 0.0  ;;  %4258 = vmatpush3.bf16.msra.mxu1 %v5118_v34 }
 0x201   : > { %v1620_v20 = vrot.slane %v1551_v62, 1  ;;  %v1991_v18 = vrot.slane %v1551_v62, 2  ;;  %v1618_v59 = vrot.slane %v1491_v58, 1  ;;  %v1623_v49 = vrot.slane %v1494_v24, 1  ;;  %4259 = vmatprep.subr.bf16.mxu1 %v5120_v54 }
 0x202   : > { %v6239_v36 = vpack.c.bf16 %v1491_v58, %v1489_v13  ;;  %v6241_v48 = vpack.c.bf16 %v1494_v24, %v1492_v8  ;;  %v1989_v37 = vrot.slane %v1491_v58, 2  ;;  %v1994_v42 = vrot.slane %v1494_v24, 2 }
 0x203   : > { %v1619_v11 = vsel %vm414_vm1, %v1617_v6, %v1618_v59  ;;  %v1621_v57 = vsel %vm414_vm1, %v1618_v59, %v1620_v20  ;;  %v1624_v40 = vsel %vm414_vm1, %v1622_v53, %v1623_v49  ;;  %v1626_v33 = vsel %vm414_vm1, %v1623_v49, %v1625_v38 }
 0x204   : > { %v6247_v7 = vpack.c.bf16 %v1621_v57, %v1619_v11  ;;  %v6249_v39 = vpack.c.bf16 %v1626_v33, %v1624_v40  ;;  %4260 = vmatpush3.bf16.msra.mxu1 %v5120_v54  ;;  %v1990_v35 = vsel %vm525_vm0, %v1988_v31, %v1989_v37  ;;  %v1992_v34 = vsel %vm525_vm0, %v1989_v37, %v1991_v18 }
 0x205   : > { %4277 = vmatprep.subr.bf16.mxu1 %v6237_v19  ;;  %v6254_v32 = vpack.c.bf16 %v1992_v34, %v1990_v35  ;;  %v1995_v56 = vsel %vm525_vm0, %v1993_v41, %v1994_v42  ;;  %v1997_v8 = vsel %vm525_vm0, %v1994_v42, %v1996_v21  ;;  %v1402_v13 = vadd.s32 6, %v6096_v50 }
 0x206   : > { %4109 = vmatprep.mubr.bf16.mxu0 %v6247_v7  ;;  %4234 = vmatmul.mubr.bf16.gmra.mrb[4].mxu1 %v6247_v7  ;;  %v6260_v17 = vpack.c.bf16 %v1997_v8, %v1995_v56  ;;  %vm1413_vm8 = vcmp.ge.s32.totalorder %v1403_v22, 0  ;;  %vm1423_vm9 = vcmp.lt.s32.totalorder %v1403_v22, 16 }
 0x207   : > { %4110 = vmatmul.mubr.bf16.gmra.mrb[28].mxu0 %v6249_v39  ;;  %4237 = vmatprep.mubr.bf16.mxu1 %v6249_v39  ;;  %vm1412_vm10 = vcmp.ge.s32.totalorder %v1402_v13, 0  ;;  %vm1422_vm11 = vcmp.lt.s32.totalorder %v1402_v13, 16  ;;  %vm1433_vm12 = vmand %vm1413_vm8, %vm1423_vm9 }
 0x208   : > { %vm1432_vm13 = vmand %vm1412_vm10, %vm1422_vm11 }
 0x215   : > { %v4079_v43 = vpop.f32.mrb[12].mxu0 }
 0x216   : > { %v1353_v2 = vadd.f32 %v4079_v43, %v6102_v15  ;;  %v1344_v29 = vpop.f32.mrb[13].mxu0 }
 0x217   : > { %v1345_v61 = vadd.f32 %v6102_v15, %v1344_v29  ;;  %v4080_v54 = vpop.f32.mrb[14].mxu0 }
 0x218   : > { %v1389_v53 = vmax.f32 %v1353_v2, 0.0  ;;  %v1356_v41 = vadd.f32 %v4080_v54, %v6102_v15  ;;  %v1347_v10 = vpop.f32.mrb[15].mxu0 }
 0x219   : > { %v1387_v60 = vmax.f32 %v1345_v61, 0.0  ;;  %v1348_v6 = vadd.f32 %v6102_v15, %v1347_v10 }
 0x21a   : > { %v1450_v31 = vsel %vm1433_vm12, %v1389_v53, 0.0  ;;  %v1390_v24 = vmax.f32 %v1356_v41, 0.0 }
 0x21b   : > { %v1498_v5 = vrot.slane %v1450_v31, 7  ;;  %v1448_v38 = vsel %vm1432_vm13, %v1387_v60, 0.0  ;;  %v1388_v21 = vmax.f32 %v1348_v6, 0.0 }
 0x21c   : > { %v1495_v58 = vrot.slane %v1448_v38, 7  ;;  %v1451_v62 = vsel %vm1433_vm12, %v1390_v24, 0.0 }
 0x21d   : > { %v1544_v20 = vsel %vm1476_vm6, 0.0, %v1498_v5  ;;  %v1499_v18 = vrot.slane %v1451_v62, 7  ;;  %v1449_v59 = vsel %vm1432_vm13, %v1388_v21, 0.0 }
 0x21e   : > { %v1632_v49 = vrot.slane %v1544_v20, 1  ;;  %v2003_v37 = vrot.slane %v1544_v20, 2  ;;  %v1543_v42 = vsel %vm1476_vm6, 0.0, %v1495_v58  ;;  %v1496_v11 = vrot.slane %v1449_v59, 7 }
 0x21f   : > { %v1627_v57 = vrot.slane %v1543_v42, 1  ;;  %v1998_v40 = vrot.slane %v1543_v42, 2  ;;  %v1500_v33 = vsel %vm1476_vm6, %v1498_v5, %v1499_v18  ;;  %v1554_v35 = vsel %vm1476_vm6, %v1499_v18, 0.0 }
 0x220   : > { %v1635_v34 = vrot.slane %v1554_v35, 1  ;;  %v2006_v56 = vrot.slane %v1554_v35, 2  ;;  %v1497_v8 = vsel %vm1476_vm6, %v1495_v58, %v1496_v11  ;;  %v1553_v22 = vsel %vm1476_vm6, %v1496_v11, 0.0 }
 0x221   : > { %v1630_v13 = vrot.slane %v1553_v22, 1  ;;  %v2001_v43 = vrot.slane %v1553_v22, 2  ;;  %v1628_v2 = vrot.slane %v1497_v8, 1  ;;  %v1633_v29 = vrot.slane %v1500_v33, 1 }
 0x222   : > { %v6277_v61 = vpack.c.bf16 %v1497_v8, %v1495_v58  ;;  %v6279_v54 = vpack.c.bf16 %v1500_v33, %v1498_v5  ;;  %v1999_v53 = vrot.slane %v1497_v8, 2  ;;  %v2004_v41 = vrot.slane %v1500_v33, 2  ;;  %v6732_v5 = vld [vmem:[#allocation18_spill] sm:$0xff] }
 0x223   : > { %v1629_v10 = vsel %vm414_vm1, %v1627_v57, %v1628_v2  ;;  %v1631_v60 = vsel %vm414_vm1, %v1628_v2, %v1630_v13  ;;  %v1634_v6 = vsel %vm414_vm1, %v1632_v49, %v1633_v29  ;;  %v1636_v31 = vsel %vm414_vm1, %v1633_v29, %v1635_v34 }
 0x224   : > { %v6285_v24 = vpack.c.bf16 %v1631_v60, %v1629_v10  ;;  %v6287_v38 = vpack.c.bf16 %v1636_v31, %v1634_v6  ;;  %v2000_v21 = vsel %vm525_vm0, %v1998_v40, %v1999_v53  ;;  %v2002_v58 = vsel %vm525_vm0, %v1999_v53, %v2001_v43  ;;  %v5117_v10 = vld [vmem:[#allocation2 + $0xa0] sm:$0xff]  }
 0x225   : > { %v6295_v62 = vpack.c.bf16 %v2002_v58, %v2000_v21  ;;  %v2005_v20 = vsel %vm525_vm0, %v2003_v37, %v2004_v41  ;;  %v2007_v18 = vsel %vm525_vm0, %v2004_v41, %v2006_v56  ;;  %v1405_v49 = vadd.s32 9, %v6096_v50  ;;  %v5111_v37 = vld [vmem:[#allocation2 + $0x88] sm:$0xff]   ;;  %v5115_v56 = vld [vmem:[#allocation2 + $0x98] sm:$0xff]  }
 0x226   : > { %4113 = vmatprep.mubr.bf16.mxu0 %v6285_v24  ;;  %4238 = vmatmul.mubr.bf16.gmra.mrb[8].mxu1 %v6285_v24  ;;  %v6301_v59 = vpack.c.bf16 %v2007_v18, %v2005_v20  ;;  %v1404_v42 = vadd.s32 8, %v6096_v50 }
 0x227   : > { %4114 = vmatmul.mubr.bf16.gmra.mrb[32].mxu0 %v6287_v38  ;;  %4241 = vmatprep.mubr.bf16.mxu1 %v6287_v38  ;;  %vm1415_vm5 = vcmp.ge.s32.totalorder %v1405_v49, 0  ;;  %vm1425_vm7 = vcmp.lt.s32.totalorder %v1405_v49, 16 }
 0x228   : > { %4133 = vmatprep.mubr.msk.bf16.mxu0 %vm6291_vm4, %v3695_v16  ;;  %vm1414_vm8 = vcmp.ge.s32.totalorder %v1404_v42, 0  ;;  %vm1424_vm9 = vcmp.lt.s32.totalorder %v1404_v42, 16  ;;  %vm6320_vm10 = vmand %vm1415_vm5, %vm1425_vm7 }
 0x229   : > { %vm6325_vm11 = vmand %vm1414_vm8, %vm1424_vm9 }
 0x22f   : > { %4134 = vmatmul.mubr.msk.bf16.vlgmr.msra.gmra.mrb[20].mxu0 %vm6291_vm4, %v6125_v46 }
 0x230   : > { %4137 = vmatprep.mubr.msk.bf16.mxu0 %vm6291_vm4, %v6181_v4  ;;  %4150 = vmatpush3.bf16.msra.mxu0 %v6195_v3 }
 0x231   : > { %4151 = vmatprep.subr.bf16.mxu0 %v5111_v37 }
 0x232   : > { %v4083_v25 = vpop.f32.mrb[16].mxu0 }
 0x233   : > { %v1369_v16 = vadd.f32 %v4083_v25, %v6102_v15  ;;  %v1360_v50 = vpop.f32.mrb[17].mxu0 }
 0x234   : > { %v1361_v57 = vadd.f32 %v6102_v15, %v1360_v50  ;;  %v4084_v40 = vpop.f32.mrb[18].mxu0  ;;  %4152 = vmatpush3.bf16.msra.mxu0 %v5111_v37 }
 0x235   : > { %v1393_v33 = vmax.f32 %v1369_v16, 0.0  ;;  %v1372_v35 = vadd.f32 %v4084_v40, %v6102_v15  ;;  %v1363_v34 = vpop.f32.mrb[19].mxu0  ;;  %4153 = vmatprep.subr.bf16.mxu0 %v5113_v44 }
 0x236   : > { %v1391_v8 = vmax.f32 %v1361_v57, 0.0  ;;  %v1364_v22 = vadd.f32 %v6102_v15, %v1363_v34  ;;  %v5119_v57 = vld [vmem:[#allocation2 + $0xa8] sm:$0xff]  }
 0x237   : > { %v1454_v13 = vsel %vm6320_vm10, %v1393_v33, 0.0  ;;  %v1394_v43 = vmax.f32 %v1372_v35, 0.0  ;;  %4138 = vmatmul.mubr.msk.bf16.gmra.mrb[24].mxu0 %vm6291_vm4, %v6183_v28 }
 0x238   : > { %v6336_v2 = vrot.slane %v1454_v13, 7  ;;  %v1452_v29 = vsel %vm6325_vm11, %v1391_v8, 0.0  ;;  %v1392_v53 = vmax.f32 %v1364_v22, 0.0  ;;  %4141 = vmatprep.mubr.msk.bf16.mxu0 %vm6291_vm4, %v6239_v36  ;;  %4154 = vmatpush3.bf16.msra.mxu0 %v5113_v44 }
 0x239   : > { %v1501_v15 = vrot.slane %v1452_v29, 7  ;;  %v1455_v41 = vsel %vm6320_vm10, %v1394_v43, 0.0  ;;  %4155 = vmatprep.subr.bf16.mxu0 %v5115_v56 }
 0x23a   : > { %v1546_v60 = vsel %vm1476_vm6, 0.0, %v6336_v2  ;;  %v1505_v6 = vrot.slane %v1455_v41, 7  ;;  %v1453_v31 = vsel %vm6325_vm11, %v1392_v53, 0.0  ;;  %v5121_v41 = vld [vmem:[#allocation2 + $0xb0] sm:$0xff]  }
 0x23b   : > { %v2944_v21 = vrot.slane %v1546_v60, 1  ;;  %v3130_v58 = vrot.slane %v1546_v60, 2  ;;  %v1545_v20 = vsel %vm1476_vm6, 0.0, %v1501_v15  ;;  %v1502_v18 = vrot.slane %v1453_v31, 7 }
 0x23c   : > { %v2391_v49 = vrot.slane %v1545_v20, 1  ;;  %v2577_v37 = vrot.slane %v1545_v20, 2  ;;  %v6352_v42 = vsel %vm1476_vm6, %v6336_v2, %v1505_v6  ;;  %v1556_v44 = vsel %vm1476_vm6, %v1505_v6, 0.0  ;;  %4156 = vmatpush3.bf16.msra.mxu0 %v5115_v56 }
 0x23d   : > { %v2947_v25 = vrot.slane %v1556_v44, 1  ;;  %v3131_v16 = vrot.slane %v6352_v42, 2  ;;  %v3133_v50 = vrot.slane %v1556_v44, 2  ;;  %v1503_v11 = vsel %vm1476_vm6, %v1501_v15, %v1502_v18  ;;  %4157 = vmatprep.subr.bf16.mxu0 %v5117_v10  ;;  %v5127_v44 = vld [vmem:[#allocation2 + $0xc8] sm:$0xff]  }
 0x23e   : > { %v1555_v40 = vsel %vm1476_vm6, %v1502_v18, 0.0  ;;  %v2392_v33 = vrot.slane %v1503_v11, 1  ;;  %v2578_v3 = vrot.slane %v1503_v11, 2  ;;  %v6358_v35 = vpack.c.bf16 %v1503_v11, %v1501_v15  ;;  %v5134_v11 = vld [vmem:[#allocation2 + $0x1b0] sm:$0xff]  }
 0x23f   : > { %v6361_v34 = vsel %vm525_vm0, %v3130_v58, %v3131_v16  ;;  %v6364_v8 = vsel %vm525_vm0, %v3131_v16, %v3133_v50  ;;  %v2394_v56 = vrot.slane %v1555_v40, 1  ;;  %v2580_v22 = vrot.slane %v1555_v40, 2  ;;  %4142 = vmatmul.mubr.msk.bf16.gmra.mrb[28].mxu0 %vm6291_vm4, %v6241_v48  ;;  %v5133_v16 = vld [vmem:[#allocation2 + $0xe0] sm:$0xff]   ;;  %v5135_v50 = vld [vmem:[#allocation2 + $0xe8] sm:$0xff]   ;;  %v5137_v40 = vld [vmem:[#allocation2 + $0xf0] sm:$0xff]  }
 0x240   : > { %v3137_v13 = vpack.c.bf16 %v6364_v8, %v6361_v34  ;;  %4145 = vmatprep.mubr.msk.bf16.mxu0 %vm6291_vm4, %v6277_v61  ;;  %4158 = vmatpush3.bf16.msra.mxu0 %v5117_v10  ;;  %v2393_v43 = vsel %vm414_vm1, %v2391_v49, %v2392_v33  ;;  %v2579_v29 = vsel %vm525_vm0, %v2577_v37, %v2578_v3  ;;  %v2945_v53 = vrot.slane %v6352_v42, 1  ;;  %v5123_v49 = vld [vmem:[#allocation2 + $0xb8] sm:$0xff]   ;;  %v5125_v37 = vld [vmem:[#allocation2 + $0xc0] sm:$0xff]  }
 0x241   : > { %4159 = vmatprep.subr.bf16.mxu0 %v5119_v57  ;;  %v2395_v15 = vsel %vm414_vm1, %v2392_v33, %v2394_v56  ;;  %v2581_v60 = vsel %vm525_vm0, %v2578_v3, %v2580_v22  ;;  %v3827_v6 = vpack.c.bf16 %v6352_v42, %v6336_v2  ;;  %v5139_v33 = vld [vmem:[#allocation2 + $0xf8] sm:$0xff]   ;;  %v5138_v3 = vld [vmem:[#allocation2 + $0x1c0] sm:$0xff]   ;;  %v5140_v56 = vld [vmem:[#allocation2 + $0x1c8] sm:$0xff]  }
 0x242   : > { %v6381_v31 = vpack.c.bf16 %v2395_v15, %v2393_v43  ;;  %v6383_v58 = vpack.c.bf16 %v2581_v60, %v2579_v29  ;;  %v6386_v10 = vsel %vm414_vm1, %v2944_v21, %v2945_v53  ;;  %v6389_v20 = vsel %vm414_vm1, %v2945_v53, %v2947_v25  ;;  %v5124_v21 = vld [vmem:[#allocation2 + $0x188] sm:$0xff]   ;;  %v5126_v25 = vld [vmem:[#allocation2 + $0x190] sm:$0xff]   ;;  %v6422_v22 = vld [vmem:[#allocation2 + $0x200] sm:$0xff]  }
 0x243   : > { %v2951_v18 = vpack.c.bf16 %v6389_v20, %v6386_v10  ;;  %v6430_v43 = vld [vmem:[#allocation2 + $0x208] sm:$0xff]   ;;  %v5144_v29 = vld [vmem:[#allocation2 + $0x1d8] sm:$0xff]   ;;  %v5145_v53 = vld [vmem:[#allocation2 + $0x210] sm:$0xff]  }
 0x244   : > { %4242 = vmatmul.mubr.bf16.gmra.mrb[12].mxu1 %v6381_v31  ;;  %4160 = vmatpush3.bf16.msra.mxu0 %v5119_v57  ;;  %v5136_v57 = vld [vmem:[#allocation2 + $0x1b8] sm:$0xff]   ;;  %v5148_v15 = vld [vmem:[#allocation2 + $0x1e8] sm:$0xff]  }
 0x245   : > { %4261 = vmatprep.mubr.bf16.mxu1 %v6142_v12  ;;  %4161 = vmatprep.subr.bf16.mxu0 %v5121_v41  ;;  %v5152_v60 = vld [vmem:[#allocation2 + $0x1f8] sm:$0xff]  }
 0x247   : > { %4146 = vmatmul.mubr.msk.bf16.gmra.mrb[32].mxu0 %vm6291_vm4, %v6279_v54 }
 0x248   : > { %4162 = vmatpush3.bf16.msra.mxu0 %v5121_v41  ;;  %4165 = vmatprep.mubr.bf16.mxu0 %v2024_v63  ;;  %v5131_v63 = vld [vmem:[#allocation2 + $0xd8] sm:$0xff]   ;;  %v5149_v41 = vld [vmem:[#allocation2 + $0x220] sm:$0xff]  }
 0x249   : > { %4163 = vmatprep.subr.bf16.mxu0 %v5123_v49 }
 0x24c   : > { %4262 = vmatmul.mubr.bf16.vlgmr.msra.gmra.mrb[0].mxu1 %v6189_v55  ;;  %4164 = vmatpush3.bf16.msra.mxu0 %v5123_v49  ;;  %v5153_v49 = vld [vmem:[#allocation2 + $0x230] sm:$0xff]  }
 0x24d   : > { %4278 = vmatpush3.bf16.msra.mxu1 %v6237_v19  ;;  %4265 = vmatprep.mubr.bf16.mxu1 %v6203_v23  ;;  %v5130_v19 = vld [vmem:[#allocation2 + $0x1a0] sm:$0xff]  }
 0x24e   : > { %4279 = vmatprep.subr.bf16.mxu1 %v5124_v21  ;;  %4181 = vmatprep.subr.bf16.mxu0 %v5125_v37 }
 0x24f   : > { %4166 = vmatmul.mubr.bf16.vlgmr.msra.gmra.mrb[20].mxu0 %v6142_v12  ;;  %v5132_v12 = vld [vmem:[#allocation2 + $0x1a8] sm:$0xff]  }
 0x250   : > { %4169 = vmatprep.mubr.bf16.mxu0 %v6189_v55  ;;  %4182 = vmatpush3.bf16.msra.mxu0 %v5125_v37 }
 0x251   : > { %4280 = vmatpush3.bf16.msra.mxu1 %v5124_v21  ;;  %4183 = vmatprep.subr.bf16.mxu0 %v5127_v44 }
 0x252   : > { %4281 = vmatprep.subr.bf16.mxu1 %v5126_v25 }
 0x254   : > { %4266 = vmatmul.mubr.bf16.gmra.mrb[4].mxu1 %v6254_v32  ;;  %4184 = vmatpush3.bf16.msra.mxu0 %v5127_v44 }
 0x255   : > { %4282 = vmatpush3.bf16.msra.mxu1 %v5126_v25  ;;  %4269 = vmatprep.mubr.bf16.mxu1 %v6260_v17 }
 0x256   : > { %4283 = vmatprep.subr.bf16.mxu1 %v5128_v51  ;;  %4185 = vmatprep.subr.bf16.mxu0 %v5129_v9 }
 0x257   : > { %4170 = vmatmul.mubr.bf16.gmra.mrb[24].mxu0 %v6203_v23 }
 0x258   : > { %4173 = vmatprep.mubr.bf16.mxu0 %v6254_v32  ;;  %4186 = vmatpush3.bf16.msra.mxu0 %v5129_v9 }
 0x259   : > { %4284 = vmatpush3.bf16.msra.mxu1 %v5128_v51  ;;  %4187 = vmatprep.subr.bf16.mxu0 %v5131_v63 }
 0x25a   : > { %4285 = vmatprep.subr.bf16.mxu1 %v5130_v19 }
 0x25c   : > { %4270 = vmatmul.mubr.bf16.gmra.mrb[8].mxu1 %v6295_v62  ;;  %4188 = vmatpush3.bf16.msra.mxu0 %v5131_v63 }
 0x25d   : > { %4286 = vmatpush3.bf16.msra.mxu1 %v5130_v19  ;;  %4273 = vmatprep.mubr.bf16.mxu1 %v6301_v59 }
 0x25e   : > { %4287 = vmatprep.subr.bf16.mxu1 %v5132_v12  ;;  %4189 = vmatprep.subr.bf16.mxu0 %v5133_v16 }
 0x25f   : > { %4174 = vmatmul.mubr.bf16.gmra.mrb[28].mxu0 %v6260_v17 }
 0x260   : > { %4177 = vmatprep.mubr.bf16.mxu0 %v6295_v62  ;;  %4190 = vmatpush3.bf16.msra.mxu0 %v5133_v16 }
 0x261   : > { %4288 = vmatpush3.bf16.msra.mxu1 %v5132_v12  ;;  %4191 = vmatprep.subr.bf16.mxu0 %v5135_v50 }
 0x262   : > { %4289 = vmatprep.subr.bf16.mxu1 %v5134_v11 }
 0x264   : > { %4274 = vmatmul.mubr.bf16.gmra.mrb[12].mxu1 %v6383_v58  ;;  %4192 = vmatpush3.bf16.msra.mxu0 %v5135_v50 }
 0x265   : > { %4290 = vmatpush3.bf16.msra.mxu1 %v5134_v11  ;;  %4293 = vmatprep.mubr.msk.bf16.mxu1 %vm6291_vm4, %v6181_v4 }
 0x266   : > { %4291 = vmatprep.subr.bf16.mxu1 %v5136_v57  ;;  %4193 = vmatprep.subr.bf16.mxu0 %v5137_v40 }
 0x267   : > { %4178 = vmatmul.mubr.bf16.gmra.mrb[32].mxu0 %v6301_v59 }
 0x268   : > { %4194 = vmatpush3.bf16.msra.mxu0 %v5137_v40  ;;  %4197 = vmatprep.mubr.msk.bf16.mxu0 %vm6291_vm4, %v6125_v46  ;;  %v5142_v46 = vld [vmem:[#allocation2 + $0x1d0] sm:$0xff]  }
 0x269   : > { %4292 = vmatpush3.bf16.msra.mxu1 %v5136_v57  ;;  %4195 = vmatprep.subr.bf16.mxu0 %v5139_v33 }
 0x26a   : > { %4309 = vmatprep.subr.bf16.mxu1 %v5138_v3 }
 0x26c   : > { %4294 = vmatmul.mubr.msk.bf16.vlgmr.msra.gmra.mrb[0].mxu1 %vm6291_vm4, %v6183_v28  ;;  %4196 = vmatpush3.bf16.msra.mxu0 %v5139_v33 }
 0x26d   : > { %4310 = vmatpush3.bf16.msra.mxu1 %v5138_v3  ;;  %4297 = vmatprep.mubr.msk.bf16.mxu1 %vm6291_vm4, %v6239_v36 }
 0x26e   : > { %4311 = vmatprep.subr.bf16.mxu1 %v5140_v56  ;;  %4341 = vmatprep.subr.bf16.mxu0 %v6422_v22 }
 0x26f   : > { %4198 = vmatmul.mubr.msk.bf16.vlgmr.msra.gmra.mrb[20].mxu0 %vm6291_vm4, %v6181_v4  ;;  %v5147_v4 = vld [vmem:[#allocation2 + $0x218] sm:$0xff]  }
 0x270   : > { %4201 = vmatprep.mubr.msk.bf16.mxu0 %vm6291_vm4, %v6183_v28  ;;  %4342 = vmatpush3.bf16.msra.mxu0 %v6422_v22  ;;  %v5146_v28 = vld [vmem:[#allocation2 + $0x1e0] sm:$0xff]  }
 0x271   : > { %4312 = vmatpush3.bf16.msra.mxu1 %v5140_v56  ;;  %4343 = vmatprep.subr.bf16.mxu0 %v6430_v43 }
 0x272   : > { %4313 = vmatprep.subr.bf16.mxu1 %v5142_v46 }
 0x274   : > { %4298 = vmatmul.mubr.msk.bf16.gmra.mrb[4].mxu1 %vm6291_vm4, %v6241_v48  ;;  %4344 = vmatpush3.bf16.msra.mxu0 %v6430_v43 }
 0x275   : > { %4314 = vmatpush3.bf16.msra.mxu1 %v5142_v46  ;;  %4301 = vmatprep.mubr.msk.bf16.mxu1 %vm6291_vm4, %v6277_v61 }
 0x276   : > { %4315 = vmatprep.subr.bf16.mxu1 %v5144_v29  ;;  %4345 = vmatprep.subr.bf16.mxu0 %v5145_v53 }
 0x277   : > { %4202 = vmatmul.mubr.msk.bf16.gmra.mrb[24].mxu0 %vm6291_vm4, %v6239_v36  ;;  %v5151_v36 = vld [vmem:[#allocation2 + $0x228] sm:$0xff]  }
 0x278   : > { %4205 = vmatprep.mubr.msk.bf16.mxu0 %vm6291_vm4, %v6241_v48  ;;  %4346 = vmatpush3.bf16.msra.mxu0 %v5145_v53  ;;  %v5150_v48 = vld [vmem:[#allocation2 + $0x1f0] sm:$0xff]  }
 0x279   : > { %4316 = vmatpush3.bf16.msra.mxu1 %v5144_v29  ;;  %4347 = vmatprep.subr.bf16.mxu0 %v5147_v4 }
 0x27a   : > { %4317 = vmatprep.subr.bf16.mxu1 %v5146_v28 }
 0x27c   : > { %4302 = vmatmul.mubr.msk.bf16.gmra.mrb[8].mxu1 %vm6291_vm4, %v6279_v54  ;;  %4348 = vmatpush3.bf16.msra.mxu0 %v5147_v4 }
 0x27d   : > { %4318 = vmatpush3.bf16.msra.mxu1 %v5146_v28  ;;  %4305 = vmatprep.mubr.msk.bf16.mxu1 %vm6291_vm4, %v6358_v35 }
 0x27e   : > { %4319 = vmatprep.subr.bf16.mxu1 %v5148_v15  ;;  %4349 = vmatprep.subr.bf16.mxu0 %v5149_v41 }
 0x27f   : > { %4206 = vmatmul.mubr.msk.bf16.gmra.mrb[28].mxu0 %vm6291_vm4, %v6277_v61  ;;  %v5154_v61 = vld [vmem:[#allocation2 + $0x238] sm:$0xff]  }
 0x280   : > { %4209 = vmatprep.mubr.msk.bf16.mxu0 %vm6291_vm4, %v6279_v54  ;;  %4350 = vmatpush3.bf16.msra.mxu0 %v5149_v41  ;;  %v6727_v54 = vld [vmem:[#allocation13_spill] sm:$0xff] }
 0x281   : > { %4320 = vmatpush3.bf16.msra.mxu1 %v5148_v15  ;;  %4351 = vmatprep.subr.bf16.mxu0 %v5151_v36 }
 0x282   : > { %4321 = vmatprep.subr.bf16.mxu1 %v5150_v48 }
 0x284   : > { %4306 = vmatmul.mubr.msk.bf16.gmra.mrb[12].mxu1 %vm6291_vm4, %v3827_v6  ;;  %4352 = vmatpush3.bf16.msra.mxu0 %v5151_v36 }
 0x285   : > { %4322 = vmatpush3.bf16.msra.mxu1 %v5150_v48  ;;  %4325 = vmatprep.mubr.bf16.mxu1 %v6191_v14  ;;  %v3355_v14 = vpack.c.bf16 %v5514_v52, %v5506_v47  ;;  %v6724_v47 = vld [vmem:[#allocation10_spill] sm:$0xff] }
 0x286   : > { %4323 = vmatprep.subr.bf16.mxu1 %v5152_v60  ;;  %4353 = vmatprep.subr.bf16.mxu0 %v5153_v49  ;;  %v3358_v52 = vpack.c.bf16 %v6724_v47, %v5602_v45 }
 0x287   : > { %4210 = vmatmul.mubr.msk.bf16.gmra.mrb[32].mxu0 %vm6291_vm4, %v6358_v35 }
 0x288   : > { %4354 = vmatpush3.bf16.msra.mxu0 %v5153_v49  ;;  %4357 = vmatprep.mubr.bf16.mxu0 %v6189_v55  ;;  %v3363_v55 = vld [vmem:[%s6672_s5] sm:$0x3] }
 0x289   : > { %4324 = vmatpush3.bf16.msra.mxu1 %v5152_v60  ;;  %4355 = vmatprep.subr.bf16.mxu0 %v5154_v61 }
 0x28a   : > { %4391 = vmatprep.subr.bf16.mxu1 %v6422_v22 }
 0x28c   : > { %4326 = vmatmul.mubr.bf16.vlgmr.msra.gmra.mrb[0].mxu1 %v6197_v30  ;;  %4356 = vmatpush3.bf16.msra.mxu0 %v5154_v61  ;;  %v3396_v30 = vsel %vm1258_vm2, %v3363_v55, 0 }
 0x28d   : > { %4399 = vmatpush3.bf16.msra.mxu1 %v6422_v22  ;;  %4329 = vmatprep.mubr.bf16.mxu1 %v6247_v7  ;;  %v3357_v7 = vpack.c.bf16 %v5574_v27, %v5571_v26  ;;  %v6731_v27 = vld [vmem:[#allocation17_spill] sm:$0xff] }
 0x28e   : > { %4392 = vmatprep.subr.bf16.mxu1 %v6430_v43  ;;  %v3362_v45 = vpack.c.bf16 %v6732_v5, %v6731_v27 }
 0x28f   : > { %4358 = vmatmul.mubr.bf16.vlgmr.msra.gmra.mrb[36].mxu0 %v6203_v23  ;;  %v3356_v23 = vpack.c.bf16 %v5539_v1, %v5536_v0  ;;  %v6729_v1 = vld [vmem:[#allocation15_spill] sm:$0xff] }
 0x290   : > { %4361 = vmatprep.mubr.bf16.mxu0 %v6254_v32  ;;  %v6726_v32 = vld [vmem:[#allocation12_spill] sm:$0xff] }
 0x291   : > { %4400 = vmatpush3.bf16.msra.mxu1 %v6430_v43 }
 0x292   : > { %4393 = vmatprep.subr.bf16.mxu1 %v5145_v53 }
 0x294   : > { %4330 = vmatmul.mubr.bf16.gmra.mrb[4].mxu1 %v6249_v39  ;;  %v6725_v39 = vld [vmem:[#allocation11_spill] sm:$0xff] }
 0x295   : > { %4333 = vmatprep.mubr.bf16.mxu1 %v6285_v24  ;;  %4401 = vmatpush3.bf16.msra.mxu1 %v5145_v53  ;;  %v6728_v24 = vld [vmem:[#allocation14_spill] sm:$0xff] }
 0x296   : > { %4394 = vmatprep.subr.bf16.mxu1 %v5147_v4  ;;  %v3360_v0 = vpack.c.bf16 %v6728_v24, %v6727_v54 }
 0x297   : > { %4362 = vmatmul.mubr.bf16.gmra.mrb[40].mxu0 %v6260_v17  ;;  %v3359_v17 = vpack.c.bf16 %v6726_v32, %v6725_v39 }
 0x298   : > { %4365 = vmatprep.mubr.bf16.mxu0 %v6295_v62 }
 0x299   : > { %4402 = vmatpush3.bf16.msra.mxu1 %v5147_v4 }
 0x29a   : > { %4395 = vmatprep.subr.bf16.mxu1 %v5149_v41 }
 0x29c   : > { %4334 = vmatmul.mubr.bf16.gmra.mrb[8].mxu1 %v6287_v38  ;;  %v6730_v38 = vld [vmem:[#allocation16_spill] sm:$0xff] }
 0x29d   : > { %4337 = vmatprep.mubr.bf16.mxu1 %v6381_v31  ;;  %4403 = vmatpush3.bf16.msra.mxu1 %v5149_v41  ;;  %v3361_v26 = vpack.c.bf16 %v6730_v38, %v6729_v1 }
 0x29e   : > { %4396 = vmatprep.subr.bf16.mxu1 %v5151_v36 }
 0x29f   : > { %4366 = vmatmul.mubr.bf16.gmra.mrb[44].mxu0 %v6301_v59 }
 0x2a1   : > { %4404 = vmatpush3.bf16.msra.mxu1 %v5151_v36 }
 0x2a2   : > { %4397 = vmatprep.subr.bf16.mxu1 %v5153_v49 }
 0x2a4   : > { %4338 = vmatmul.mubr.bf16.gmra.mrb[12].mxu1 %v2951_v18 }
 0x2a5   : > { %4369 = vmatprep.mubr.bf16.mxu1 %v6383_v58  ;;  %4405 = vmatpush3.bf16.msra.mxu1 %v5153_v49 }
 0x2a6   : > { %4398 = vmatprep.subr.bf16.mxu1 %v5154_v61 }
 0x2a9   : > { %4406 = vmatpush3.bf16.msra.mxu1 %v5154_v61 }
 0x2aa   : > { %4584 = vmatprep.subr.msk.bf16.mxu1 %vm1258_vm2, %v3363_v55 }
 0x2b0   : > { %4370 = vmatmul.mubr.bf16.vlgmr.msra.gmra.mrb[12].mxu1 %v3137_v13 }
 0x2b1   : > { %4374 = vmatpush3.bf16.msra.mxu1 %v3396_v30  ;;  %4375 = vmatprep.mubr.msk.bf16.mxu1 %vm1022_vm3, %v3355_v14 }
 0x2b8   : > { %4376 = vmatmul.mubr.msk.bf16.vlgmr.msra.gmra.mrb[16].mxu1 %vm1022_vm3, %v3356_v23 }
 0x2b9   : > { %4379 = vmatprep.mubr.msk.bf16.mxu1 %vm1022_vm3, %v3357_v7 }
 0x2c0   : > { %4380 = vmatmul.mubr.msk.bf16.gmra.mrb[20].mxu1 %vm1022_vm3, %v3358_v52 }
 0x2c1   : > { %4383 = vmatprep.mubr.msk.bf16.mxu1 %vm1022_vm3, %v3359_v17 }
 0x2c8   : > { %4384 = vmatmul.mubr.msk.bf16.gmra.mrb[24].mxu1 %vm1022_vm3, %v3360_v0 }
 0x2c9   : > { %4387 = vmatprep.mubr.msk.bf16.mxu1 %vm1022_vm3, %v3361_v26 }
 0x2d0   : > { %4388 = vmatmul.mubr.msk.bf16.gmra.mrb[12].mxu1 %vm1022_vm3, %v3362_v45 }
 0x342   : > { %v4199_v62 = vpop.f32.mrb[20].mxu0 }
 0x343   : > { %v2310_v59 = vpop.f32.mrb[21].mxu0 }
 0x344   : > { %v4200_v2 = vpop.f32.mrb[22].mxu0 }
 0x345   : > { %v2313_v42 = vpop.f32.mrb[23].mxu0 }
 0x34a   : > { %v4203_v35 = vpop.f32.mrb[24].mxu0 }
 0x34b   : > { %v2326_v34 = vpop.f32.mrb[25].mxu0 }
 0x34c   : > { %v4204_v8 = vpop.f32.mrb[26].mxu0 }
 0x34d   : > { %v2329_v13 = vpop.f32.mrb[27].mxu0 }
 0x352   : > { %v4207_v6 = vpop.f32.mrb[28].mxu0 }
 0x353   : > { %v2342_v31 = vpop.f32.mrb[29].mxu0 }
 0x354   : > { %v4208_v58 = vpop.f32.mrb[30].mxu0 }
 0x355   : > { %v2345_v10 = vpop.f32.mrb[31].mxu0 }
 0x35a   : > { %v6527_v20 = vpop.f32.mrb[32].mxu0 }
 0x35b   : > { %v6529_v18 = vpop.f32.mrb[33].mxu0 }
 0x35c   : > { %v6531_v21 = vpop.f32.mrb[34].mxu0 }
 0x35d   : > { %v6533_v37 = vpop.f32.mrb[35].mxu0 }
 0x35f   : > { %v4327_v44 = vpop.f32.mrb[0].mxu1 }
 0x360   : > { %v4407_v25 = vadd.f32 %v4327_v44, %v4199_v62  ;;  %v3051_v51 = vpop.f32.mrb[1].mxu1  ;;  %v6538_v62 = vld [vmem:[%s6671_s4] ss:$0 sm:$0xff] }
 0x361   : > { %v4412_v9 = vadd.f32 %v3051_v51, %v2310_v59  ;;  %v4328_v63 = vpop.f32.mrb[2].mxu1 }
 0x362   : > { %v4417_v19 = vadd.f32 %v4328_v63, %v4200_v2  ;;  %v3054_v12 = vpop.f32.mrb[3].mxu1  ;;  %v4359_v16 = vpop.f32.mrb[36].mxu0 }
 0x363   : > { %v4422_v50 = vadd.f32 %v3054_v12, %v2313_v42  ;;  %v4408_v11 = vadd.f32 %v4407_v25, %v4359_v16  ;;  %v3237_v57 = vpop.f32.mrb[37].mxu0 }
 0x364   : > { %v4413_v40 = vadd.f32 %v4412_v9, %v3237_v57  ;;  %v4360_v33 = vpop.f32.mrb[38].mxu0 }
 0x365   : > { %v4418_v3 = vadd.f32 %v4417_v19, %v4360_v33  ;;  %v3240_v56 = vpop.f32.mrb[39].mxu0  ;;  %v4409_v42 = vadd.f32 %v4408_v11, %v6538_v62 }
 0x366   : > { %v4423_v22 = vadd.f32 %v4422_v50, %v3240_v56 }
 0x367   : > { %v4331_v43 = vpop.f32.mrb[4].mxu1  ;;  %v4419_v59 = vadd.f32 %v4418_v3, %v6538_v62 }
 0x368   : > { %v4427_v46 = vadd.f32 %v4331_v43, %v4203_v35  ;;  %v3067_v29 = vpop.f32.mrb[5].mxu1  ;;  %v4424_v2 = vadd.f32 %v4423_v22, %v6538_v62 }
 0x369   : > { %v4432_v53 = vadd.f32 %v3067_v29, %v2326_v34  ;;  %v4332_v4 = vpop.f32.mrb[6].mxu1  ;;  %v6547_v34 = vld [vmem:[%s6673_s6] ss:$0 sm:$0xff] }
 0x36a   : > { %v4437_v28 = vadd.f32 %v4332_v4, %v4204_v8  ;;  %v3070_v15 = vpop.f32.mrb[7].mxu1  ;;  %v4363_v41 = vpop.f32.mrb[40].mxu0  ;;  %v4414_v8 = vadd.f32 %v4413_v40, %v6538_v62  ;;  %v4425_v44 = vadd.f32 %v4424_v2, %v6547_v34 }
 0x36b   : > { %v4442_v36 = vadd.f32 %v3070_v15, %v2329_v13  ;;  %v4428_v48 = vadd.f32 %v4427_v46, %v4363_v41  ;;  %v3253_v60 = vpop.f32.mrb[41].mxu0 }
 0x36c   : > { %v4433_v49 = vadd.f32 %v4432_v53, %v3253_v60  ;;  %v4364_v61 = vpop.f32.mrb[42].mxu0 }
 0x36d   : > { %v4438_v55 = vadd.f32 %v4437_v28, %v4364_v61  ;;  %v3256_v14 = vpop.f32.mrb[43].mxu0  ;;  %v4429_v25 = vadd.f32 %v4428_v48, %v6538_v62 }
 0x36e   : > { %v4443_v30 = vadd.f32 %v4442_v36, %v3256_v14  ;;  %v4434_v19 = vadd.f32 %v4433_v49, %v6538_v62 }
 0x36f   : > { %v4335_v23 = vpop.f32.mrb[8].mxu1  ;;  %v4439_v50 = vadd.f32 %v4438_v55, %v6538_v62  ;;  %v4430_v56 = vadd.f32 %v4429_v25, %v6547_v34 }
 0x370   : > { %v4447_v7 = vadd.f32 %v4335_v23, %v4207_v6  ;;  %v3083_v47 = vpop.f32.mrb[9].mxu1  ;;  %v4444_v40 = vadd.f32 %v4443_v30, %v6538_v62  ;;  %v4435_v43 = vadd.f32 %v4434_v19, %v6547_v34 }
 0x371   : > { %v4452_v52 = vadd.f32 %v3083_v47, %v2342_v31  ;;  %v4336_v39 = vpop.f32.mrb[10].mxu1  ;;  %v4420_v31 = vadd.f32 %v4419_v59, %v6547_v34  ;;  %v4440_v53 = vadd.f32 %v4439_v50, %v6547_v34 }
 0x372   : > { %v4457_v32 = vadd.f32 %v4336_v39, %v4208_v58  ;;  %v3086_v17 = vpop.f32.mrb[11].mxu1  ;;  %v4367_v54 = vpop.f32.mrb[44].mxu0  ;;  %v4445_v15 = vadd.f32 %v4444_v40, %v6547_v34 }
 0x373   : > { %v4462_v24 = vadd.f32 %v3086_v17, %v2345_v10  ;;  %v4448_v0 = vadd.f32 %v4447_v7, %v4367_v54  ;;  %v3269_v1 = vpop.f32.mrb[45].mxu0 }
 0x374   : > { %v4453_v38 = vadd.f32 %v4452_v52, %v3269_v1  ;;  %v4368_v26 = vpop.f32.mrb[46].mxu0 }
 0x375   : > { %v4458_v27 = vadd.f32 %v4457_v32, %v4368_v26  ;;  %v3272_v5 = vpop.f32.mrb[47].mxu0  ;;  %v4449_v41 = vadd.f32 %v4448_v0, %v6538_v62 }
 0x376   : > { %v4463_v45 = vadd.f32 %v4462_v24, %v3272_v5  ;;  %v4454_v49 = vadd.f32 %v4453_v38, %v6538_v62  ;;  %v4467_v38 = vadd.f32 %v6527_v20, %v6538_v62  ;;  %v4476_v20 = vadd.f32 %v6538_v62, %v6533_v37 }
 0x377   : > { %v4459_v14 = vadd.f32 %v4458_v27, %v6538_v62  ;;  %v4450_v47 = vadd.f32 %v4449_v41, %v6547_v34 }
 0x378   : > { %v4464_v23 = vadd.f32 %v4463_v45, %v6538_v62  ;;  %v4455_v39 = vadd.f32 %v4454_v49, %v6547_v34  ;;  %v4470_v45 = vadd.f32 %v6538_v62, %v6529_v18  ;;  %v4477_v37 = vadd.f32 %v4476_v20, %v6547_v34 }
 0x379   : > { %v4460_v54 = vadd.f32 %v4459_v14, %v6547_v34 }
 0x37a   : > { %v4465_v1 = vadd.f32 %v4464_v23, %v6547_v34 }
 0x38b   : > { %v4377_v35 = vpop.f32.mrb[16].mxu1 }
 0x38c   : > { %v4410_v13 = vadd.f32 %v4409_v42, %v4377_v35  ;;  %v3432_v6 = vpop.f32.mrb[17].mxu1  ;;  %v4473_v42 = vadd.f32 %v6531_v21, %v6538_v62 }
 0x38d   : > { %v4415_v58 = vadd.f32 %v4414_v8, %v3432_v6  ;;  %v4378_v10 = vpop.f32.mrb[18].mxu1  ;;  %v4471_v6 = vadd.f32 %v4470_v45, %v6547_v34 }
 0x38e   : > { %v4411_v51 = vadd.f32 %v4410_v13, %v6547_v34  ;;  %v4421_v9 = vadd.f32 %v4420_v31, %v4378_v10  ;;  %v3435_v63 = vpop.f32.mrb[19].mxu1  ;;  %v4468_v13 = vadd.f32 %v4467_v38, %v6547_v34 }
 0x38f   : > { %v4416_v12 = vadd.f32 %v4415_v58, %v6547_v34  ;;  %v4426_v16 = vadd.f32 %v4425_v44, %v3435_v63  ;;  %v4474_v58 = vadd.f32 %v4473_v42, %v6547_v34 }
 0x390   : > { %v3513_v11 = vmax.f32 %v4411_v51, 0.0  ;;  %v3514_v57 = vmax.f32 %v4421_v9, 0.0 }
 0x391   : > { %v3511_v33 = vmax.f32 %v4416_v12, 0.0  ;;  %v3512_v3 = vmax.f32 %v4426_v16, 0.0 }
 0x392   : > { %3529 = vst [vmem:[%s6560_s19 + $0x10] sm:$0xff] %v3513_v11  ;;  %3530 = vst [vmem:[%s6560_s19 + $0x18] sm:$0xff] %v3514_v57 }
 0x393   : > { %3527 = vst [vmem:[%s6560_s19] sm:$0xff] %v3511_v33  ;;  %3528 = vst [vmem:[%s6560_s19 + $0x8] sm:$0xff] %v3512_v3  ;;  %v4381_v22 = vpop.f32.mrb[20].mxu1 }
 0x394   : > { %v4431_v46 = vadd.f32 %v4430_v56, %v4381_v22  ;;  %v3448_v29 = vpop.f32.mrb[21].mxu1 }
 0x395   : > { %v4436_v4 = vadd.f32 %v4435_v43, %v3448_v29  ;;  %v4382_v28 = vpop.f32.mrb[22].mxu1 }
 0x396   : > { %v3517_v36 = vmax.f32 %v4431_v46, 0.0  ;;  %v4441_v48 = vadd.f32 %v4440_v53, %v4382_v28  ;;  %v3451_v60 = vpop.f32.mrb[23].mxu1 }
 0x397   : > { %v3515_v61 = vmax.f32 %v4436_v4, 0.0  ;;  %v4446_v55 = vadd.f32 %v4445_v15, %v3451_v60 }
 0x398   : > { %3533 = vst [vmem:[%s6560_s19 + $0x30] sm:$0xff] %v3517_v36  ;;  %v3518_v30 = vmax.f32 %v4441_v48, 0.0 }
 0x399   : > { %3531 = vst [vmem:[%s6560_s19 + $0x20] sm:$0xff] %v3515_v61  ;;  %v3516_v7 = vmax.f32 %v4446_v55, 0.0 }
 0x39a   : > { %3534 = vst [vmem:[%s6560_s19 + $0x38] sm:$0xff] %v3518_v30 }
 0x39b   : > { %3532 = vst [vmem:[%s6560_s19 + $0x28] sm:$0xff] %v3516_v7  ;;  %v4385_v52 = vpop.f32.mrb[24].mxu1 }
 0x39c   : > { %v4451_v32 = vadd.f32 %v4450_v47, %v4385_v52  ;;  %v3464_v17 = vpop.f32.mrb[25].mxu1 }
 0x39d   : > { %v4456_v24 = vadd.f32 %v4455_v39, %v3464_v17  ;;  %v4386_v0 = vpop.f32.mrb[26].mxu1 }
 0x39e   : > { %v3521_v26 = vmax.f32 %v4451_v32, 0.0  ;;  %v4461_v27 = vadd.f32 %v4460_v54, %v4386_v0  ;;  %v3467_v5 = vpop.f32.mrb[27].mxu1 }
 0x39f   : > { %v3519_v59 = vmax.f32 %v4456_v24, 0.0  ;;  %v4466_v2 = vadd.f32 %v4465_v1, %v3467_v5 }
 0x3a0   : > { %3537 = vst [vmem:[%s6560_s19 + $0x50] sm:$0xff] %v3521_v26  ;;  %v3522_v35 = vmax.f32 %v4461_v27, 0.0 }
 0x3a1   : > { %3535 = vst [vmem:[%s6560_s19 + $0x40] sm:$0xff] %v3519_v59  ;;  %v3520_v8 = vmax.f32 %v4466_v2, 0.0 }
 0x3a2   : > { %3538 = vst [vmem:[%s6560_s19 + $0x58] sm:$0xff] %v3522_v35 }
 0x3a3   : > { %3536 = vst [vmem:[%s6560_s19 + $0x48] sm:$0xff] %v3520_v8  ;;  %v4389_v18 = vpop.f32.mrb[12].mxu1 }
 0x3a4   : > { %v4469_v21 = vadd.f32 %v4468_v13, %v4389_v18  ;;  %v3480_v31 = vpop.f32.mrb[13].mxu1 }
 0x3a5   : > { %v4472_v10 = vadd.f32 %v4471_v6, %v3480_v31  ;;  %v4390_v44 = vpop.f32.mrb[14].mxu1 }
 0x3a6   : > { %v3525_v62 = vmax.f32 %v4469_v21, 0.0  ;;  %v4475_v25 = vadd.f32 %v4474_v58, %v4390_v44  ;;  %v3483_v51 = vpop.f32.mrb[15].mxu1 }
 0x3a7   : > { %v3523_v9 = vmax.f32 %v4472_v10, 0.0  ;;  %v4478_v63 = vadd.f32 %v4477_v37, %v3483_v51 }
 0x3a8   : > { %3541 = vst [vmem:[%s6560_s19 + $0x70] sm:$0xff] %v3525_v62  ;;  %v3526_v19 = vmax.f32 %v4475_v25, 0.0 }
 0x3a9   : > { %3539 = vst [vmem:[%s6560_s19 + $0x60] sm:$0xff] %v3523_v9  ;;  %v3524_v12 = vmax.f32 %v4478_v63, 0.0 }
 0x3aa   : > { %3542 = vst [vmem:[%s6560_s19 + $0x78] sm:$0xff] %v3526_v19 }
 0x3ab   : > { %3540 = vst [vmem:[%s6560_s19 + $0x68] sm:$0xff] %v3524_v12 }
 0x3ac   : > { %5196 = shalt.err (!%p5193_p7)
}
 0x3ad   : > { %s5197_s17 = scalar_lea.hbm %s6608_s23, 2048  ;;  %s5201_s28 = scalar_lea.hbm %s6674_s7, 8192 }
 0x3ae   : > { %p5198_p9 = scmp.ne.s32.totalorder %s6608_s23, %s5197_s17  ;;  %p5202_p1 = scmp.lt.u32.totalorder %s6608_s23, %s6674_s7 }
 0x3af   : > { %p5203_p4 = scmp.lt.u32.totalorder %s5201_s28, %s5197_s17  ;;  %p5205_p8 = scmp.lt.u32.totalorder %s5197_s17, %s6608_s23 }
 0x3b0   : > { %p5199_p11 = pnand %p5198_p9, %p6733_p10 }
 0x3b1   : > { %p5204_p3 = por %p5203_p4, %p5202_p1 }
 0x3b2   : > { %p5200_p13 = pneg %p5199_p11 }
 0x3b3   : > { %p5206_p12 = por %p5205_p8, %p5204_p3 }
 0x3b5   : > { %p5207_p0 = pnand %p5206_p12, %p5200_p13 }
 0x3b7   : > { %5210 = shalt.err (!%p5207_p0)
}
 0x3b8   : > { %s5296_s9 = smov 128  }
 0x3b9   : > { %4590 = dma.vmem_to_hbm [thread:$0]  (%p6733_p10), %s6602_s27, 2048, %s6608_s23, %s6614_s18, %s5296_s9, %s5296_s9, %s5287_s20  }
 0x3ba PF: > { %p4602_p2 = scmp.ge.s32.totalorder %s5281_s8, 2  ;;  %s3575_s12 = sand.u32 1, %s5253_s24  }
 0x3bb   : > { %p6734_p5 = scmp.ne.s32.totalorder %s6693_s16, 0  ;;  %s3576_s14 = scalar_lea.sflag [#allocation4], %s3575_s12 }
 0x3bd   : > { %p4597_p6 = pnand %p4602_p2, %p6734_p5 }
 0x3bf   : > { %5248 = dma.done.wait (!%p4597_p6), %s3576_s14, 2048  }
 0x3c0   : > { %5250 = vsyncadd (!%p4597_p6), %s3576_s14, 4294965248  ;;  %s21_s8 = sadd.s32 1, %s5281_s8   ;;  %s6735_s15 = sld [smem:[#allocation8_spill]] }
 0x3c1   : > { %p18_p7 = scmp.ge.s32.totalorder %s21_s8, 6   ;;  %s6736_s20 = sld [smem:[#allocation9_spill]] }
 0x3c2   : > { %s6737_s24 = smov %s5257_s25  ;;  %s6738_s25 = smov %s5261_s26 }
 0x3c3   : > { %s6739_s26 = smov %s5416_s21  ;;  %s6740_s27 = smov %s5273_s29 }
 0x3c4   : > { %s6741_s28 = smov %s5277_s30  ;;  %20 = sbr.rel (!%p18_p7) target bundleno = 6 (0x6), region = 97 }
 0x3c6   : > { %s6742_s29 = smov %s6735_s15 }
 0x3c7   : > { %s6743_s30 = smov %s6736_s20 }
 0x3cb   :  { %3581 = vsyncpa [#allocation3], 1 }
 0x3cc   :  { %3583 = vsyncpa [#allocation3 + $0x1], 1 }
 0x3cd   :  { %3584 = vsyncpa [#allocation4], 1 }
 0x3ce   :  { %3586 = vsyncpa [#allocation4 + $0x1], 1 }

</bundles_post_ra>
